<compile_context>
chip_gen: v7x
topology: tpu7x:2x2x1
jax: 0.10.0
libtpu: 0.0.40
codegen_flags: <defaults>
</compile_context>

<pallas_src>
import jax
import jax.numpy as jnp
import numpy as np
from jax.experimental import pallas as pl
from jax.experimental.pallas import tpu as pltpu


def _leaky_relu(x, slope=0.01):
    return jnp.where(x >= 0, x, slope * x)


# ---------------------------------------------------------------------------
# Pallas kernel: one B_TILE batch slab per grid step
# ---------------------------------------------------------------------------
def cnn_att1_kernel(x_ref, wc_ref, bc_ref, watt_ref, wfc_ref, bfc_ref, out_ref):
    # x_ref   : [B_TILE, S, D]   input slab (f32 or bf16)
    # wc_ref  : [K*D, H]         conv weight, row k*D+d  <->  torch conv.weight[h, d, k]
    # bc_ref  : [1, H]           conv bias                       (f32)
    # watt_ref: [H, 1]           attention-score weight          (f32)
    # wfc_ref : [H, L]           output linear weight (transposed)
    # bfc_ref : [1, L]           output linear bias              (f32)
    # out_ref : [B_TILE, L]
    bt, s, d_in = x_ref.shape
    k_taps = wc_ref.shape[0] // d_in
    h_dim = wc_ref.shape[1]
    pad = (k_taps - 1) // 2

    x = x_ref[...]

    # ---- im2col along lanes: column block k holds x shifted by (k - pad) sequence
    #      positions, zero-filled at the 'same'-padding boundary.  All slices are
    #      static, so this is in-VMEM shuffling (no HBM pad round trip).
    cols = []
    for k in range(k_taps):
        shift = k - pad
        if shift == 0:
            cols.append(x)
            continue
        nz = min(abs(shift), s)            # zero boundary rows
        nk = s - nz                        # rows kept from x
        zeros = jnp.zeros((bt, nz, d_in), x.dtype)
        if nk == 0:
            cols.append(zeros)
        elif shift < 0:
            cols.append(jnp.concatenate([zeros, x[:, :nk, :]], axis=1))
        else:
            cols.append(jnp.concatenate([x[:, s - nk:, :], zeros], axis=1))
    xi = jnp.concatenate(cols, axis=2).reshape(bt * s, k_taps * d_in)

    # ---- Conv1d('same') as a single 2-D MXU matmul (M = B_TILE*S), bias, LeakyReLU.
    h = jnp.dot(xi, wc_ref[...], preferred_element_type=jnp.float32)     # [bt*S, H] f32
    h = _leaky_relu(h + bc_ref[...])

    # ---- Self-attention pooling: MXU score matvec, softmax over the sequence axis.
    # NOTE: the PyTorch attention bias is a scalar added to every sequence position and
    # cancels exactly under softmax, so it is not passed to the kernel.
    # TODO(synk): optional additive att_mask is not wired in (att_mask=None path only).
    att = jnp.dot(h, watt_ref[...], preferred_element_type=jnp.float32)  # [bt*S, 1]

    h3 = h.reshape(bt, s, h_dim)
    att3 = att.reshape(bt, s, 1)
    att3 = att3 - jnp.max(att3, axis=1, keepdims=True)
    e = jnp.exp(att3)
    w = e * pl.reciprocal(jnp.sum(e, axis=1, keepdims=True), approx=True)
    pooled = jnp.sum(h3 * w, axis=1)                                      # [bt, H] f32

    # ---- Output head: LeakyReLU -> Linear.
    pooled = _leaky_relu(pooled)
    out = (jnp.dot(pooled.astype(wfc_ref.dtype), wfc_ref[...],
                   preferred_element_type=jnp.float32)
           + bfc_ref[...])
    out_ref[...] = out.astype(out_ref.dtype)


# ---------------------------------------------------------------------------
# Wrapper
# ---------------------------------------------------------------------------
def cnn_att1_forward(x, params, *, b_tile=8, compute_dtype=jnp.float32):
    """x: [B, S, input_dim] (or [B, input_dim]) -> [B, num_labels] (float32)."""
    wc, bc, watt, batt, wfc, bfc = params
    del batt  # scalar bias on the attention score: exact no-op under softmax
    if x.ndim == 2:                        # matches features.unsqueeze(1) in PyTorch
        x = x[:, None, :]
    B, S, D = x.shape
    L = wfc.shape[-1]

    # Batch tile: a multiple of 8 (sublane-dense (B_TILE, L) output slabs) unless the
    # whole batch is smaller than that.
    if B <= b_tile:
        b_tile = B
    else:
        b_tile = max(8, (b_tile // 8) * 8)
    n_blocks = -(-B // b_tile)             # cdiv
    b_pad = n_blocks * b_tile
    if b_pad != B:
        x = jnp.pad(x, ((0, b_pad - B), (0, 0), (0, 0)))

    # bf16 operands halve x/weight DMA bytes and use the MXU's native input format;
    # accumulation stays f32 via preferred_element_type.
    x_c = x.astype(compute_dtype)
    wc_c = wc.astype(compute_dtype)
    wfc_c = wfc.astype(compute_dtype)

    # For large shapes: weights (constant index maps) could additionally use
    # pipeline_mode=pl.Buffered(1) and an explicit vmem_limit_bytes to budget
    # v7x's smaller (64 MiB) VMEM; unnecessary at these sizes.
    out = pl.pallas_call(
        cnn_att1_kernel,
        out_shape=jax.ShapeDtypeStruct((b_pad, L), jnp.float32),
        grid_spec=pltpu.PrefetchScalarGridSpec(
            num_scalar_prefetch=0,
            grid=(n_blocks,),
            in_specs=[
                pl.BlockSpec((b_tile, S, D), lambda i: (i, 0, 0)),  # streamed batch slab
                pl.BlockSpec(wc_c.shape, lambda i: (0, 0)),         # VMEM-resident weights
                pl.BlockSpec(bc.shape, lambda i: (0, 0)),
                pl.BlockSpec(watt.shape, lambda i: (0, 0)),
                pl.BlockSpec(wfc_c.shape, lambda i: (0, 0)),
                pl.BlockSpec(bfc.shape, lambda i: (0, 0)),
            ],
            out_specs=pl.BlockSpec((b_tile, L), lambda i: (i, 0)),
        ),
        compiler_params=pltpu.CompilerParams(
            dimension_semantics=("parallel",)),   # megacore sharding on v7x
    )(x_c, wc_c, bc, watt, wfc_c, bfc)
    return out[:B]


# ---------------------------------------------------------------------------
# Pure-JAX reference (same math, f32 HIGHEST) for correctness check
# ---------------------------------------------------------------------------
def cnn_att1_reference(x, params):
    wc, bc, watt, batt, wfc, bfc = params
    if x.ndim == 2:
        x = x[:, None, :]
    B, S, D = x.shape
    H = bc.shape[-1]
    K = wc.shape[0] // D
    pad = (K - 1) // 2
    xp = jnp.pad(x, ((0, 0), (pad, pad), (0, 0)))

    h = jnp.zeros((B, S, H), jnp.float32)
    for k in range(K):
        h = h + jnp.einsum('bsd,dh->bsh', xp[:, k:k + S, :],
                           wc[k * D:(k + 1) * D, :],
                           precision=jax.lax.Precision.HIGHEST)
    h = _leaky_relu(h + bc[None])

    # batt IS applied here (as in PyTorch); it cancels under softmax, which the
    # kernel exploits by dropping it.
    att = jnp.einsum('bsh,ho->bso', h, watt,
                     precision=jax.lax.Precision.HIGHEST)[..., 0] + batt[0, 0]
    w = jax.nn.softmax(att, axis=-1)[..., None]                  # [B, S, 1]
    pooled = jnp.sum(h * w, axis=1)                              # [B, H]
    pooled = _leaky_relu(pooled)
    return jnp.dot(pooled, wfc, precision=jax.lax.Precision.HIGHEST) + bfc


# ---------------------------------------------------------------------------
# Deterministic synthetic parameters (PyTorch-like init scales, Pallas layouts)
#   wc[k*D + d, h]  <->  conv.weight[h, d, k]
#   watt            <->  attpooling.W.weight.T        ([H, 1])
#   wfc             <->  out_layer[1].weight.T        ([H, L])
# ---------------------------------------------------------------------------
def make_params(key, input_dim, hidden_dim, kernel_size, num_labels):
    keys = jax.random.split(key, 6)
    s_conv = 1.0 / np.sqrt(input_dim * kernel_size)
    s_head = 1.0 / np.sqrt(hidden_dim)
    wc = jax.random.uniform(keys[0], (kernel_size * input_dim, hidden_dim),
                            jnp.float32, minval=-s_conv, maxval=s_conv)
    bc = jax.random.uniform(keys[1], (1, hidden_dim), jnp.float32,
                            minval=-s_conv, maxval=s_conv)
    watt = jax.random.uniform(keys[2], (hidden_dim, 1), jnp.float32,
                              minval=-s_head, maxval=s_head)
    batt = jax.random.uniform(keys[3], (1, 1), jnp.float32,
                              minval=-s_head, maxval=s_head)
    wfc = jax.random.uniform(keys[4], (hidden_dim, num_labels), jnp.float32,
                             minval=-s_head, maxval=s_head)
    bfc = jax.random.uniform(keys[5], (1, num_labels), jnp.float32,
                             minval=-s_head, maxval=s_head)
    return (wc, bc, watt, batt, wfc, bfc)


if __name__ == "__main__":
    B, S, D_in = 16, 16, 16           # batch, seq_len, input_dim
    H, K, num_labels = 16, 5, 2       # module defaults: hidden_dim=16, kernel=5, padding=2

    key = jax.random.PRNGKey(0)
    kx, kp = jax.random.split(key)
    x = jax.random.normal(kx, (B, S, D_in), jnp.float32)
    params = make_params(kp, D_in, H, K, num_labels)

    ref = cnn_att1_reference(x, params)

    # f32 operand path: tight check (tolerance leaves headroom for the EUP
    # approx-reciprocal used in the softmax normalization).
    out = cnn_att1_forward(x, params, b_tile=8, compute_dtype=jnp.float32)
    out = jax.block_until_ready(out)
    assert out.shape == (B, num_labels)
    np.testing.assert_allclose(np.asarray(out), np.asarray(ref), rtol=2e-3, atol=2e-3)

    # bf16 matmul-operand path (MXU-native format for scaled shapes): relaxed tolerance.
    out_bf16 = cnn_att1_forward(x, params, b_tile=8, compute_dtype=jnp.bfloat16)
    out_bf16 = jax.block_until_ready(out_bf16)
    np.testing.assert_allclose(np.asarray(out_bf16), np.asarray(ref), rtol=3e-2, atol=3e-2)

    print("KERNEL_OK")
</pallas_src>

<mosaic_0001>
module attributes {stable_mosaic.version = 11 : i64} {
  func.func @cnn_att1_kernel(%arg0: i32, %arg1: memref<8x16x16xf32, #tpu.memory_space<vmem>>, %arg2: memref<80x16xf32, #tpu.memory_space<vmem>>, %arg3: memref<1x16xf32, #tpu.memory_space<vmem>>, %arg4: memref<16x1xf32, #tpu.memory_space<vmem>>, %arg5: memref<16x2xf32, #tpu.memory_space<vmem>>, %arg6: memref<1x2xf32, #tpu.memory_space<vmem>>, %arg7: memref<8x2xf32, #tpu.memory_space<vmem>>) attributes {dimension_semantics = [#tpu.dimension_semantics<parallel>], iteration_bounds = array<i64: 2>, scalar_prefetch = 0 : i64, scratch_operands = 0 : i64, tpu.core_type = #tpu.core_type<tc>, window_params = [{transform_indices = @transform_0, window_bounds = array<i64: 8, 16, 16>}, {pipeline_mode = #tpu.pipeline_mode<synchronous>, transform_indices = @transform_1, window_bounds = array<i64: 80, 16>}, {pipeline_mode = #tpu.pipeline_mode<synchronous>, transform_indices = @transform_2, window_bounds = array<i64: 1, 16>}, {pipeline_mode = #tpu.pipeline_mode<synchronous>, transform_indices = @transform_3, window_bounds = array<i64: 16, 1>}, {pipeline_mode = #tpu.pipeline_mode<synchronous>, transform_indices = @transform_4, window_bounds = array<i64: 16, 2>}, {pipeline_mode = #tpu.pipeline_mode<synchronous>, transform_indices = @transform_5, window_bounds = array<i64: 1, 2>}, {transform_indices = @transform_6, window_bounds = array<i64: 8, 2>}]} {
    %c0 = arith.constant 0 : index
    %c0_0 = arith.constant 0 : index
    %c0_1 = arith.constant 0 : index
    %0 = vector.load %arg1[%c0, %c0_0, %c0_1] : memref<8x16x16xf32, #tpu.memory_space<vmem>>, vector<8x16x16xf32>
    %cst = arith.constant 0.000000e+00 : f32
    %1 = vector.broadcast %cst : f32 to vector<8x2x16xf32>
    %2 = vector.extract_strided_slice %0 {offsets = [0, 0, 0], sizes = [8, 14, 16], strides = [1, 1, 1]} : vector<8x16x16xf32> to vector<8x14x16xf32>
    %3 = tpu.concatenate %1, %2 in 1 : vector<8x2x16xf32>, vector<8x14x16xf32> -> vector<8x16x16xf32>
    %cst_2 = arith.constant 0.000000e+00 : f32
    %4 = vector.broadcast %cst_2 : f32 to vector<8x1x16xf32>
    %5 = vector.extract_strided_slice %0 {offsets = [0, 0, 0], sizes = [8, 15, 16], strides = [1, 1, 1]} : vector<8x16x16xf32> to vector<8x15x16xf32>
    %6 = tpu.concatenate %4, %5 in 1 : vector<8x1x16xf32>, vector<8x15x16xf32> -> vector<8x16x16xf32>
    %cst_3 = arith.constant 0.000000e+00 : f32
    %7 = vector.broadcast %cst_3 : f32 to vector<8x1x16xf32>
    %8 = vector.extract_strided_slice %0 {offsets = [0, 1, 0], sizes = [8, 15, 16], strides = [1, 1, 1]} : vector<8x16x16xf32> to vector<8x15x16xf32>
    %9 = tpu.concatenate %8, %7 in 1 : vector<8x15x16xf32>, vector<8x1x16xf32> -> vector<8x16x16xf32>
    %cst_4 = arith.constant 0.000000e+00 : f32
    %10 = vector.broadcast %cst_4 : f32 to vector<8x2x16xf32>
    %11 = vector.extract_strided_slice %0 {offsets = [0, 2, 0], sizes = [8, 14, 16], strides = [1, 1, 1]} : vector<8x16x16xf32> to vector<8x14x16xf32>
    %12 = tpu.concatenate %11, %10 in 1 : vector<8x14x16xf32>, vector<8x2x16xf32> -> vector<8x16x16xf32>
    %13 = tpu.concatenate %3, %6, %0, %9, %12 in 2 : vector<8x16x16xf32>, vector<8x16x16xf32>, vector<8x16x16xf32>, vector<8x16x16xf32>, vector<8x16x16xf32> -> vector<8x16x80xf32>
    %14 = vector.shape_cast %13 : vector<8x16x80xf32> to vector<128x80xf32>
    %c0_5 = arith.constant 0 : index
    %c0_6 = arith.constant 0 : index
    %15 = vector.load %arg2[%c0_5, %c0_6] : memref<80x16xf32, #tpu.memory_space<vmem>>, vector<80x16xf32>
    %cst_7 = arith.constant dense<0.000000e+00> : vector<128x16xf32>
    %16 = tpu.matmul %14, %15, %cst_7 {dimension_numbers = #tpu.dot_dimension_numbers<[1], [0], [0], [1], [0, 0, 1, 1], [], []>} : vector<128x80xf32>, vector<80x16xf32>, vector<128x16xf32> -> vector<128x16xf32>
    %c0_8 = arith.constant 0 : index
    %c0_9 = arith.constant 0 : index
    %17 = vector.load %arg3[%c0_8, %c0_9] : memref<1x16xf32, #tpu.memory_space<vmem>>, vector<1x16xf32>
    %18 = vector.broadcast %17 : vector<1x16xf32> to vector<128x16xf32>
    %19 = arith.addf %16, %18 : vector<128x16xf32>
    %cst_10 = arith.constant 0.000000e+00 : f32
    %20 = vector.broadcast %cst_10 : f32 to vector<128x16xf32>
    %21 = arith.cmpf oge, %19, %20 : vector<128x16xf32>
    %cst_11 = arith.constant 0.00999999977 : f32
    %22 = vector.broadcast %cst_11 : f32 to vector<128x16xf32>
    %23 = arith.mulf %22, %19 : vector<128x16xf32>
    %24 = arith.select %21, %19, %23 : vector<128x16xi1>, vector<128x16xf32>
    %c0_12 = arith.constant 0 : index
    %c0_13 = arith.constant 0 : index
    %25 = vector.load %arg4[%c0_12, %c0_13] : memref<16x1xf32, #tpu.memory_space<vmem>>, vector<16x1xf32>
    %cst_14 = arith.constant dense<0.000000e+00> : vector<128x1xf32>
    %26 = tpu.matmul %24, %25, %cst_14 {dimension_numbers = #tpu.dot_dimension_numbers<[1], [0], [0], [1], [0, 0, 1, 1], [], []>} : vector<128x16xf32>, vector<16x1xf32>, vector<128x1xf32> -> vector<128x1xf32>
    %27 = vector.shape_cast %24 : vector<128x16xf32> to vector<8x16x16xf32>
    %28 = vector.shape_cast %26 : vector<128x1xf32> to vector<8x16x1xf32>
    %cst_15 = arith.constant dense<0xFF800000> : vector<8x1xf32>
    %29 = vector.multi_reduction <maximumf>, %28, %cst_15 [1] : vector<8x16x1xf32> to vector<8x1xf32>
    %30 = vector.shape_cast %29 : vector<8x1xf32> to vector<8x1x1xf32>
    %31 = vector.broadcast %30 : vector<8x1x1xf32> to vector<8x16x1xf32>
    %32 = arith.subf %28, %31 : vector<8x16x1xf32>
    %33 = math.exp %32 : vector<8x16x1xf32>
    %cst_16 = arith.constant dense<0.000000e+00> : vector<8x1xf32>
    %34 = vector.multi_reduction <add>, %33, %cst_16 [1] : vector<8x16x1xf32> to vector<8x1xf32>
    %35 = vector.shape_cast %34 : vector<8x1xf32> to vector<8x1x1xf32>
    %36 = tpu.reciprocal %35 {approx = true} : vector<8x1x1xf32> -> vector<8x1x1xf32>
    %37 = vector.broadcast %36 : vector<8x1x1xf32> to vector<8x16x1xf32>
    %38 = arith.mulf %33, %37 : vector<8x16x1xf32>
    %39 = vector.broadcast %38 : vector<8x16x1xf32> to vector<8x16x16xf32>
    %40 = arith.mulf %27, %39 : vector<8x16x16xf32>
    %cst_17 = arith.constant dense<0.000000e+00> : vector<8x16xf32>
    %41 = vector.multi_reduction <add>, %40, %cst_17 [1] : vector<8x16x16xf32> to vector<8x16xf32>
    %cst_18 = arith.constant 0.000000e+00 : f32
    %42 = vector.broadcast %cst_18 : f32 to vector<8x16xf32>
    %43 = arith.cmpf oge, %41, %42 : vector<8x16xf32>
    %cst_19 = arith.constant 0.00999999977 : f32
    %44 = vector.broadcast %cst_19 : f32 to vector<8x16xf32>
    %45 = arith.mulf %44, %41 : vector<8x16xf32>
    %46 = arith.select %43, %41, %45 : vector<8x16xi1>, vector<8x16xf32>
    %c0_20 = arith.constant 0 : index
    %c0_21 = arith.constant 0 : index
    %47 = vector.load %arg5[%c0_20, %c0_21] : memref<16x2xf32, #tpu.memory_space<vmem>>, vector<16x2xf32>
    %cst_22 = arith.constant dense<0.000000e+00> : vector<8x2xf32>
    %48 = tpu.matmul %46, %47, %cst_22 {dimension_numbers = #tpu.dot_dimension_numbers<[1], [0], [0], [1], [0, 0, 1, 1], [], []>} : vector<8x16xf32>, vector<16x2xf32>, vector<8x2xf32> -> vector<8x2xf32>
    %c0_23 = arith.constant 0 : index
    %c0_24 = arith.constant 0 : index
    %49 = vector.load %arg6[%c0_23, %c0_24] : memref<1x2xf32, #tpu.memory_space<vmem>>, vector<1x2xf32>
    %50 = vector.broadcast %49 : vector<1x2xf32> to vector<8x2xf32>
    %51 = arith.addf %48, %50 : vector<8x2xf32>
    %c0_25 = arith.constant 0 : index
    %c0_26 = arith.constant 0 : index
    %52 = vector.load %arg7[%c0_25, %c0_26] : memref<8x2xf32, #tpu.memory_space<vmem>>, vector<8x2xf32>
    tpu.vector_store %arg7[%c0_25, %c0_26], %51 {strides = array<i32>} : memref<8x2xf32, #tpu.memory_space<vmem>>, vector<8x2xf32>,
    return
  }
  func.func @transform_0(%arg0: i32) -> (i32, i32, i32) {
    %c0_i32 = arith.constant 0 : i32
    %c0_i32_0 = arith.constant 0 : i32
    %c0_i32_1 = arith.constant 0 : i32
    return %arg0, %c0_i32, %c0_i32_0 : i32, i32, i32
  }
  func.func @transform_1(%arg0: i32) -> (i32, i32) {
    %c0_i32 = arith.constant 0 : i32
    %c0_i32_0 = arith.constant 0 : i32
    %c0_i32_1 = arith.constant 0 : i32
    return %c0_i32, %c0_i32_0 : i32, i32
  }
  func.func @transform_2(%arg0: i32) -> (i32, i32) {
    %c0_i32 = arith.constant 0 : i32
    %c0_i32_0 = arith.constant 0 : i32
    %c0_i32_1 = arith.constant 0 : i32
    return %c0_i32, %c0_i32_0 : i32, i32
  }
  func.func @transform_3(%arg0: i32) -> (i32, i32) {
    %c0_i32 = arith.constant 0 : i32
    %c0_i32_0 = arith.constant 0 : i32
    %c0_i32_1 = arith.constant 0 : i32
    return %c0_i32, %c0_i32_0 : i32, i32
  }
  func.func @transform_4(%arg0: i32) -> (i32, i32) {
    %c0_i32 = arith.constant 0 : i32
    %c0_i32_0 = arith.constant 0 : i32
    %c0_i32_1 = arith.constant 0 : i32
    return %c0_i32, %c0_i32_0 : i32, i32
  }
  func.func @transform_5(%arg0: i32) -> (i32, i32) {
    %c0_i32 = arith.constant 0 : i32
    %c0_i32_0 = arith.constant 0 : i32
    %c0_i32_1 = arith.constant 0 : i32
    return %c0_i32, %c0_i32_0 : i32, i32
  }
  func.func @transform_6(%arg0: i32) -> (i32, i32) {
    %c0_i32 = arith.constant 0 : i32
    %c0_i32_0 = arith.constant 0 : i32
    return %arg0, %c0_i32 : i32, i32
  }
}

</mosaic_0001>

<bundles_post_ra>
// kernel: tpu_custom_call.1
= control target key start
LH: loop header
LB: loop body
LE: loop exit
PB: predicated region body
PF: predicated region fallthrough
CT: control target
= control target key end

     0   :  { %11 = vsyncpa [#allocation3], 0  ;;  %s2874_s0 = inlined_call_operand.hbm [shape: f32[16,16,16], index: 0, kind: input, shape index: {}]   ;;  %s2875_s1 = inlined_call_operand.vmem [shape: f32[80,16], index: 1, kind: input, shape index: {}]   ;;  %s2876_s2 = inlined_call_operand.vmem [shape: f32[1,16], index: 2, kind: input, shape index: {}]   ;;  %s2877_s3 = inlined_call_operand.vmem [shape: f32[16,1], index: 3, kind: input, shape index: {}]   ;;  %s2878_s4 = inlined_call_operand.vmem [shape: f32[16,2], index: 4, kind: input, shape index: {}]   ;;  %s2879_s5 = inlined_call_operand.vmem [shape: f32[1,2], index: 5, kind: input, shape index: {}]   ;;  %s2880_s6 = inlined_call_operand.vmem [shape: f32[16,2], index: 6, kind: output, shape index: {}]  }
   0x1   :  { %13 = vsyncpa [#allocation3 + $0x1], 0  ;;  %s2206_s21 = smov 0   ;;  %s2208_s22 = smov 0  }
   0x2   :  { %s2210_s23 = smov 0   ;;  %s2212_s24 = smov 0  }
   0x3 LB: > { %s2225_s25 = sadd.s32 4294967295, %s2158_s24   ;;  %s2228_s26 = sadd.s32 1, %s2158_s24   ;;  %s2158_s24 = sphi %s2212_s24, %s2887_s24   ;;  %s2154_s23 = sphi %s2210_s23, %s2886_s23   ;;  %s2150_s22 = sphi %s2208_s22, %s2885_s22   ;;  %s2146_s21 = sphi %s2206_s21, %s2884_s21  }
   0x4   : > { %s23_s27 = ssub.s32 %s2158_s24, %s2228_s26  ;;  %s26_s28 = sadd.s32 1, %s2154_s23 }
   0x5   : > { %p24_p0 = scmp.eq.s32.totalorder %s23_s27, 0  ;;  %p33_p1 = scmp.ne.s32.totalorder %s2154_s23, %s2150_s22 }
   0x6   : > { %p34_p2 = scmp.eq.s32.totalorder %s2158_s24, 0  ;;  %p39_p3 = scmp.ne.s32.totalorder %s2150_s22, %s2146_s21 }
   0x7   : > { %s2238_s29 = scalar_select %p24_p0, %s2154_s23, %s26_s28  }
   0x8   : > { %p35_p4 = por %p34_p2, %p33_p1  ;;  %p40_p5 = scmp.eq.s32.totalorder %s2225_s25, 0 }
   0x9   : > { %p2001_p6 = scmp.lt.s32.totalorder %s2158_s24, 2  ;;  %s209_s7 = sand.u32 1, %s2154_s23  }
   0xa   : > { %p2242_p7 = por %p40_p5, %p39_p3  ;;  %s1796_s8 = sshll.u32 %s209_s7, 7 }
   0xb   : > { %s1841_s9 = sshll.u32 %s2158_s24, 11  ;;  %s213_s13 = scalar_lea.vmem [#allocation2], %s1796_s8 }
   0xc   : > { %s2251_s12 = scalar_lea.hbm %s2874_s0, %s1841_s9  ;;  %s221_s14 = sshll.u32 %s213_s13, 4  ;;  %s2253_s14 = int_to_ptr.vmem [resolvable:$true] %s221_s14 }
   0xd   : > { %p2255_p8 = pnand %p2001_p6, %p35_p4  ;;  %s2260_s16 = scalar_lea.sflag [#allocation3], %s209_s7 }
   0xe   : > { %s2094_s17 = scalar_lea.hbm %s2251_s12, 2048  ;;  %s2099_s20 = scalar_lea.hbm %s2874_s0, 4096 }
   0xf   : > { %p2095_p10 = scmp.ne.s32.totalorder %s2251_s12, %s2094_s17  ;;  %p2096_p11 = pneg %p2255_p8 }
  0x10   : > { %p2100_p0 = scmp.lt.u32.totalorder %s2251_s12, %s2874_s0  ;;  %p2101_p1 = scmp.lt.u32.totalorder %s2099_s20, %s2094_s17 }
  0x11   : > { %p2097_p12 = pnand %p2096_p11, %p2095_p10  ;;  %p2103_p3 = scmp.lt.u32.totalorder %s2094_s17, %s2251_s12 }
  0x12   : > { %p2102_p2 = por %p2101_p1, %p2100_p0 }
  0x13   : > { %p2098_p13 = pneg %p2097_p12 }
  0x14   : > { %p2104_p4 = por %p2103_p3, %p2102_p2 }
  0x16   : > { %p2105_p5 = pnand %p2104_p4, %p2098_p13 }
  0x18   : > { %2108 = shalt.err (!%p2105_p5)
}
  0x19   : > { %s2109_s28 = scalar_lea.vmem %s2253_s14, 2048  ;;  %s2160_s7 = smov [#allocation2]  }
  0x1a   : > { %p2110_p6 = scmp.ne.s32.totalorder %s2253_s14, %s2109_s28  ;;  %s2114_s8 = sshll.u32 %s2160_s7, 4  ;;  %s2115_s8 = int_to_ptr.vmem [resolvable:$false] %s2114_s8 }
  0x1b   : > { %s2116_s9 = scalar_lea.vmem %s2115_s8, 4096  ;;  %p2117_p9 = scmp.lt.s32.totalorder %s2253_s14, %s2115_s8 }
  0x1c   : > { %p2112_p10 = pnand %p2110_p6, %p2096_p11  ;;  %p2118_p0 = scmp.lt.s32.totalorder %s2116_s9, %s2109_s28 }
  0x1e   : > { %p2113_p12 = pneg %p2112_p10  ;;  %p2119_p1 = por %p2118_p0, %p2117_p9 }
  0x20   : > { %p2120_p2 = pnand %p2119_p1, %p2113_p12 }
  0x22   : > { %2123 = shalt.err (!%p2120_p2)
}
  0x23   : > { %s2161_s10 = smov 128   ;;  %s2162_s11 = smov 8  }
  0x24   : > { %2000 = dma.hbm_to_vmem [thread:$0]  (!%p2255_p8), %s2251_s12, 2048, %s2253_s14, %s2260_s16, %s2161_s10, %s2161_s10, %s2162_s11  }
  0x25   : > { %p229_p11 = scmp.lt.s32.totalorder %s2158_s24, 3  ;;  %p2883_p13 = scmp.ge.s32.totalorder %s2158_s24, 1 }
  0x27   : > { %p230_p3 = pnand %p2883_p13, %p229_p11 }
  0x28   : > { %s235_s13 = sand.u32 (!%p230_p3), 1, %s2150_s22  }
  0x29   : > { %233 = sbr.rel (%p230_p3) target bundleno = 1149 (0x47d), region = 44  ;;  %s1801_s17 = sshll.u32 (!%p230_p3), %s235_s13, 7 }
  0x2a   : > { %s236_s18 = scalar_lea.sflag (!%p230_p3), [#allocation3], %s235_s13  ;;  %s2292_s19 = scalar_lea.vmem (!%p230_p3), [#allocation2], %s1801_s17 }
  0x30   : > { %2141 = dma.done.wait (%p2242_p7), %s236_s18, 2048  }
  0x31   : > { %2143 = vsyncadd (%p2242_p7), %s236_s18, 4294965248  ;;  %v2299_v0 = vld [vmem:[%s2292_s19] sm:$0xff]  ;;  %vm353_vm0 = vcmask 1040384   ;;  %v2302_v1 = vld [vmem:[%s2292_s19 + $0x8] sm:$0xff]  ;;  %s2163_s24 = smov 32   ;;  %vm394_vm1 = vcmask 1046528  }
  0x32   : > { %532 = vrot.lane.b32.xlu1 %v2299_v0, %s2163_s24  ;;  %v354_v2 = vrot.slane %v2299_v0, 7  ;;  %v355_v3 = vrot.slane %v2302_v1, 7  ;;  %v396_v4 = vrot.slane %v2302_v1, 1  ;;  %v2311_v6 = vld [vmem:[%s2292_s19 + $0x10] sm:$0xff]  ;;  %s2164_s30 = smov 16   ;;  %v395_v8 = vrot.slane %v2299_v0, 1 }
  0x33   : > { %v357_v10 = vrot.slane %v2311_v6, 7  ;;  %v2321_v11 = vld [vmem:[%s2292_s19 + $0x18] sm:$0xff]  ;;  %s2165_s12 = smov 48   ;;  %v436_v13 = vrot.slane %v2299_v0, 2  ;;  %v437_v14 = vrot.slane %v2302_v1, 2  ;;  %vm435_vm2 = vcmask 1045504  }
  0x34   : > { %v386_v5 = vsel %vm353_vm0, 0.0, %v354_v2  ;;  %v356_v7 = vsel %vm353_vm0, %v354_v2, %v355_v3  ;;  %v427_v9 = vsel %vm394_vm1, %v396_v4, 0.0  ;;  %v397_v12 = vsel %vm394_vm1, %v395_v8, %v396_v4  ;;  %s2166_s14 = smov 64   ;;  %v2339_v21 = vld [vmem:[%s2292_s19 + $0x20] sm:$0xff]  ;;  %v761_v23 = vld [vmem:[%s2875_s1 + $0x8] sm:$0xff]  ;;  %v762_v24 = vld [vmem:[%s2875_s1 + $0x10] sm:$0xff] }
  0x35   : > { %484 = vrot.lane.b32.xlu0 %v386_v5, %s2164_s30  ;;  %v387_v15 = vsel %vm353_vm0, 0.0, %v357_v10  ;;  %v358_v16 = vrot.slane %v2321_v11, 7  ;;  %v438_v17 = vsel %vm435_vm2, %v436_v13, %v437_v14  ;;  %v468_v19 = vsel %vm435_vm2, %v437_v14, 0.0  ;;  %v760_v22 = vld [vmem:[%s2875_s1] sm:$0xff]  ;;  %v763_v25 = vld [vmem:[%s2875_s1 + $0x18] sm:$0xff]  ;;  %v2360_v29 = vld [vmem:[%s2292_s19 + $0x28] sm:$0xff] }
  0x36   : > { %534 = vrot.lane.b32.xlu1 %v2302_v1, %s2163_s24  ;;  %v399_v20 = vrot.slane %v2321_v11, 1  ;;  %v398_v26 = vrot.slane %v2311_v6, 1  ;;  %v360_v28 = vrot.slane %v2339_v21, 7  ;;  %v1968_v30 = vpack.c.bf16 %v761_v23, %v760_v22  ;;  %v764_v34 = vld [vmem:[%s2875_s1 + $0x20] sm:$0xff]  ;;  %v765_v35 = vld [vmem:[%s2875_s1 + $0x28] sm:$0xff]  ;;  %v766_v45 = vld [vmem:[%s2875_s1 + $0x30] sm:$0xff] }
  0x37   : > { %v359_v18 = vsel %vm353_vm0, %v357_v10, %v358_v16  ;;  %v1972_v31 = vpack.c.bf16 %v763_v25, %v762_v24  ;;  %v305_v32 = vrot.slane %v2299_v0, 6  ;;  %v306_v33 = vrot.slane %v2302_v1, 6  ;;  %v767_v46 = vld [vmem:[%s2875_s1 + $0x38] sm:$0xff]  ;;  %v768_v53 = vld [vmem:[%s2875_s1 + $0x40] sm:$0xff]  ;;  %v769_v54 = vld [vmem:[%s2875_s1 + $0x48] sm:$0xff]  ;;  %p268_p7 = scmp.lt.s32.totalorder %s2225_s25, 1 }
  0x38   : > { %v428_v27 = vsel %vm394_vm1, %v399_v20, 0.0  ;;  %v439_v36 = vrot.slane %v2311_v6, 2  ;;  %1969 = vmatprep.subr.bf16.mxu0 %v1968_v30  ;;  %vm304_vm3 = vcmask 1041408   ;;  %v400_v37 = vsel %vm394_vm1, %v398_v26, %v399_v20  ;;  %v2418_v58 = vld [vmem:[%s2292_s19 + $0x30] sm:$0xff]  ;;  %v279_v59 = vld [vmem:[%s2292_s19 + $0x38] sm:$0xff]  ;;  %v2448_v14 = vld [vmem:[%s2292_s19 + $0x40] sm:$0xff] }
  0x39   : > { %486 = vrot.lane.b32.xlu0 %v356_v7, %s2164_s30  ;;  %v440_v38 = vrot.slane %v2321_v11, 2  ;;  %v361_v39 = vrot.slane %v2360_v29, 7  ;;  %1971 = vmatpush3.bf16.msra.mxu0 %v1968_v30  ;;  %v2380_v40 = vsel %vm304_vm3, %v305_v32, %v306_v33  ;;  %v388_v41 = vsel %vm353_vm0, 0.0, %v360_v28  ;;  %v2476_v33 = vld [vmem:[%s2292_s19 + $0x50] sm:$0xff]  ;;  %s2889_s25 = smov (!%p268_p7, %s2225_s25), 1 }
  0x3a   : > { %590 = vrot.lane.b32.xlu1 %v427_v9, %s2165_s12  ;;  %1973 = vmatprep.subr.bf16.mxu0 %v1972_v31  ;;  %v1976_v42 = vpack.c.bf16 %v765_v35, %v764_v34  ;;  %v308_v43 = vrot.slane %v2311_v6, 6  ;;  %v309_v44 = vrot.slane %v2321_v11, 6  ;;  %v311_v49 = vrot.slane %v2339_v21, 6  ;;  %s1802_s13 = sshll.u32 %s2889_s25, 3 }
  0x3b   : > { %v441_v48 = vsel %vm435_vm2, %v439_v36, %v440_v38  ;;  %v312_v50 = vrot.slane %v2360_v29, 6  ;;  %v362_v51 = vsel %vm353_vm0, %v360_v28, %v361_v39  ;;  %v1980_v52 = vpack.c.bf16 %v767_v46, %v766_v45  ;;  %s271_s20 = scalar_lea.vmem %s2880_s6, %s1802_s13 }
  0x3c   : > { %v2395_v47 = vsel %vm304_vm3, %v308_v43, %v309_v44  ;;  %v469_v56 = vsel %vm435_vm2, %v440_v38, 0.0  ;;  %v402_v57 = vrot.slane %v2360_v29, 1  ;;  %v1984_v60 = vpack.c.bf16 %v769_v54, %v768_v53 }
  0x3d   : > { %588 = vrot.lane.b32.xlu0 %v397_v12, %s2165_s12  ;;  %1975 = vmatpush3.bf16.msra.mxu0 %v1972_v31  ;;  %v2411_v55 = vsel %vm304_vm3, %v311_v49, %v312_v50  ;;  %v314_v61 = vrot.slane %v2418_v58, 6  ;;  %v315_v62 = vrot.slane %v279_v59, 6  ;;  %v401_v63 = vrot.slane %v2339_v21, 1 }
  0x3e   : > { %488 = vrot.lane.b32.xlu1 %v387_v15, %s2164_s30  ;;  %1977 = vmatprep.subr.bf16.mxu0 %v1976_v42  ;;  %v429_v2 = vsel %vm394_vm1, %v402_v57, 0.0  ;;  %v363_v3 = vrot.slane %v2418_v58, 7  ;;  %v442_v5 = vrot.slane %v2339_v21, 2  ;;  %v443_v7 = vrot.slane %v2360_v29, 2  ;;  %v281_v15 = vld [vmem:[%s2292_s19 + $0x48] sm:$0xff] }
  0x3f   : > { %v2429_v1 = vsel %vm304_vm3, %v314_v61, %v315_v62  ;;  %v403_v4 = vsel %vm394_vm1, %v401_v63, %v402_v57  ;;  %v364_v9 = vrot.slane %v279_v59, 7  ;;  %v405_v13 = vrot.slane %v279_v59, 1 }
  0x40   : > { %v389_v8 = vsel %vm353_vm0, 0.0, %v363_v3  ;;  %v444_v10 = vsel %vm435_vm2, %v442_v5, %v443_v7  ;;  %v470_v12 = vsel %vm435_vm2, %v443_v7, 0.0  ;;  %v317_v16 = vrot.slane %v2448_v14, 6  ;;  %v2530_v7 = vld [vmem:[%s2292_s19 + $0x70] sm:$0xff] }
  0x41   : > { %644 = vrot.lane.b32.xlu0 %v438_v17, %s2166_s14  ;;  %1979 = vmatpush3.bf16.msra.mxu0 %v1976_v42  ;;  %v318_v17 = vrot.slane %v281_v15, 6  ;;  %v430_v20 = vsel %vm394_vm1, %v405_v13, 0.0  ;;  %v366_v22 = vrot.slane %v2448_v14, 7  ;;  %v445_v24 = vrot.slane %v2418_v58, 2 }
  0x42   : > { %490 = vrot.lane.b32.xlu1 %v359_v18, %s2164_s30  ;;  %1981 = vmatprep.subr.bf16.mxu0 %v1980_v52  ;;  %v404_v18 = vrot.slane %v2418_v58, 1  ;;  %v446_v25 = vrot.slane %v279_v59, 2  ;;  %v408_v31 = vrot.slane %v281_v15, 1  ;;  %v407_v34 = vrot.slane %v2448_v14, 1 }
  0x43   : > { %v390_v26 = vsel %vm353_vm0, 0.0, %v366_v22  ;;  %v369_v36 = vrot.slane %v2476_v33, 7  ;;  %v448_v39 = vrot.slane %v2448_v14, 2  ;;  %vm692_vm4 = vcmask 130048  }
  0x44   : > { %v406_v23 = vsel %vm394_vm1, %v404_v18, %v405_v13  ;;  %v447_v28 = vsel %vm435_vm2, %v445_v24, %v446_v25  ;;  %v471_v30 = vsel %vm435_vm2, %v446_v25, 0.0  ;;  %v431_v35 = vsel %vm394_vm1, %v408_v31, 0.0 }
  0x45   : > { %646 = vrot.lane.b32.xlu0 %v468_v19, %s2166_s14  ;;  %1983 = vmatpush3.bf16.msra.mxu0 %v1980_v52  ;;  %v2458_v19 = vsel %vm304_vm3, %v317_v16, %v318_v17  ;;  %v409_v38 = vsel %vm394_vm1, %v407_v34, %v408_v31  ;;  %v391_v42 = vsel %vm353_vm0, 0.0, %v369_v36  ;;  %v410_v52 = vrot.slane %v2476_v33, 1 }
  0x46   : > { %538 = vrot.lane.b32.xlu1 %v2321_v11, %s2163_s24  ;;  %1985 = vmatprep.subr.bf16.mxu0 %v1984_v60  ;;  %v365_v11 = vsel %vm353_vm0, %v363_v3, %v364_v9  ;;  %v457_v34 = vrot.slane %v2530_v7, 2  ;;  %vm709_vm5 = vcmask 261120   ;;  %vm743_vm6 = vcmask 523264  }
  0x47   : > { %vm726_vm7 = vcmask 392192   ;;  %vm777_vm8 = vcmask 654336  }
  0x49   : > { %536 = vrot.lane.b32.xlu0 %v2311_v6, %s2163_s24  ;;  %1987 = vmatpush3.bf16.msra.mxu0 %v1984_v60 }
  0x4a   : > { %594 = vrot.lane.b32.xlu1 %v428_v27, %s2165_s12  ;;  %v367_v27 = vrot.slane %v281_v15, 7 }
  0x4d   : > { %592 = vrot.lane.b32.xlu0 %v400_v37, %s2165_s12  ;;  %v2484_v37 = vld [vmem:[%s2292_s19 + $0x58] sm:$0xff] }
  0x4e   : > { %492 = vrot.lane.b32.xlu1 %v388_v41, %s2164_s30  ;;  %v449_v41 = vrot.slane %v281_v15, 2  ;;  %v370_v44 = vrot.slane %v2484_v37, 7  ;;  %v411_v50 = vrot.slane %v2484_v37, 1  ;;  %v452_v60 = vrot.slane %v2484_v37, 2 }
  0x50   : > { %v450_v45 = vsel %vm435_vm2, %v448_v39, %v449_v41  ;;  %v371_v46 = vsel %vm353_vm0, %v369_v36, %v370_v44  ;;  %v432_v53 = vsel %vm394_vm1, %v411_v50, 0.0  ;;  %v412_v57 = vsel %vm394_vm1, %v410_v52, %v411_v50 }
  0x51   : > { %648 = vrot.lane.b32.xlu0 %v441_v48, %s2166_s14  ;;  %v472_v48 = vsel %vm435_vm2, %v449_v41, 0.0 }
  0x52   : > { %494 = vrot.lane.b32.xlu1 %v362_v51, %s2164_s30  ;;  %v2502_v51 = vld [vmem:[%s2292_s19 + $0x60] sm:$0xff] }
  0x53   : > { %v372_v54 = vrot.slane %v2502_v51, 7  ;;  %v454_v13 = vrot.slane %v2502_v51, 2 }
  0x55   : > { %650 = vrot.lane.b32.xlu0 %v469_v56, %s2166_s14  ;;  %v2511_v56 = vld [vmem:[%s2292_s19 + $0x68] sm:$0xff]  ;;  %v392_v62 = vsel %vm353_vm0, 0.0, %v372_v54 }
  0x56   : > { %542 = vrot.lane.b32.xlu1 %v2360_v29, %s2163_s24  ;;  %v368_v29 = vsel %vm353_vm0, %v366_v22, %v367_v27  ;;  %v373_v63 = vrot.slane %v2511_v56, 7  ;;  %v414_v5 = vrot.slane %v2511_v56, 1 }
  0x58   : > { %v374_v3 = vsel %vm353_vm0, %v372_v54, %v373_v63  ;;  %v433_v9 = vsel %vm394_vm1, %v414_v5, 0.0  ;;  %v346_v63 = vsel %vm304_vm3, 0.0, %v308_v43 }
  0x59   : > { %540 = vrot.lane.b32.xlu0 %v2339_v21, %s2163_s24 }
  0x5a   : > { %598 = vrot.lane.b32.xlu1 %v429_v2, %s2165_s12 }
  0x5d   : > { %596 = vrot.lane.b32.xlu0 %v403_v4, %s2165_s12  ;;  %v473_v4 = vsel %vm435_vm2, %v452_v60, 0.0 }
  0x5e   : > { %496 = vrot.lane.b32.xlu1 %v389_v8, %s2164_s30  ;;  %v413_v8 = vrot.slane %v2502_v51, 1 }
  0x61   : > { %652 = vrot.lane.b32.xlu0 %v444_v10, %s2166_s14  ;;  %v375_v10 = vrot.slane %v2530_v7, 7 }
  0x62   : > { %498 = vrot.lane.b32.xlu1 %v365_v11, %s2164_s30  ;;  %v2539_v11 = vld [vmem:[%s2292_s19 + $0x78] sm:$0xff] }
  0x63   : > { %v393_v17 = vsel %vm353_vm0, 0.0, %v375_v10  ;;  %v376_v18 = vrot.slane %v2539_v11, 7  ;;  %v417_v24 = vrot.slane %v2539_v11, 1 }
  0x65   : > { %654 = vrot.lane.b32.xlu0 %v470_v12, %s2166_s14  ;;  %v415_v12 = vsel %vm394_vm1, %v413_v8, %v414_v5  ;;  %v377_v22 = vsel %vm353_vm0, %v375_v10, %v376_v18 }
  0x66   : > { %546 = vrot.lane.b32.xlu1 %v279_v59, %s2163_s24  ;;  %v451_v59 = vrot.slane %v2476_v33, 2 }
  0x68   : > { %v453_v2 = vsel %vm435_vm2, %v451_v59, %v452_v60 }
  0x69   : > { %544 = vrot.lane.b32.xlu0 %v2418_v58, %s2163_s24 }
  0x6a   : > { %602 = vrot.lane.b32.xlu1 %v430_v20, %s2165_s12 }
  0x6d   : > { %600 = vrot.lane.b32.xlu0 %v406_v23, %s2165_s12 }
  0x6e   : > { %500 = vrot.lane.b32.xlu1 %v390_v26, %s2164_s30  ;;  %v416_v26 = vrot.slane %v2530_v7, 1 }
  0x70   : > { %v418_v31 = vsel %vm394_vm1, %v416_v26, %v417_v24 }
  0x71   : > { %656 = vrot.lane.b32.xlu0 %v447_v28, %s2166_s14  ;;  %v434_v28 = vsel %vm394_vm1, %v417_v24, 0.0 }
  0x72   : > { %502 = vrot.lane.b32.xlu1 %v368_v29, %s2164_s30  ;;  %v458_v29 = vrot.slane %v2539_v11, 2 }
  0x74   : > { %v475_v36 = vsel %vm435_vm2, %v458_v29, 0.0  ;;  %v459_v41 = vsel %vm435_vm2, %v457_v34, %v458_v29 }
  0x75   : > { %658 = vrot.lane.b32.xlu0 %v471_v30, %s2166_s14 }
  0x76   : > { %550 = vrot.lane.b32.xlu1 %v281_v15, %s2163_s24  ;;  %v455_v15 = vrot.slane %v2511_v56, 2 }
  0x78   : > { %v456_v20 = vsel %vm435_vm2, %v454_v13, %v455_v15  ;;  %v474_v23 = vsel %vm435_vm2, %v455_v15, 0.0 }
  0x79   : > { %548 = vrot.lane.b32.xlu0 %v2448_v14, %s2163_s24 }
  0x7a   : > { %606 = vrot.lane.b32.xlu1 %v431_v35, %s2165_s12 }
  0x7d   : > { %604 = vrot.lane.b32.xlu0 %v409_v38, %s2165_s12  ;;  %v345_v38 = vsel %vm304_vm3, 0.0, %v305_v32 }
  0x7e   : > { %504 = vrot.lane.b32.xlu1 %v391_v42, %s2164_s30 }
  0x81   : > { %660 = vrot.lane.b32.xlu0 %v450_v45, %s2166_s14 }
  0x82   : > { %506 = vrot.lane.b32.xlu1 %v371_v46, %s2164_s30 }
  0x85   : > { %662 = vrot.lane.b32.xlu0 %v472_v48, %s2166_s14 }
  0x86   : > { %554 = vrot.lane.b32.xlu1 %v2484_v37, %s2163_s24 }
  0x89   : > { %552 = vrot.lane.b32.xlu0 %v2476_v33, %s2163_s24 }
  0x8a   : > { %610 = vrot.lane.b32.xlu1 %v432_v53, %s2165_s12 }
  0x8d   : > { %608 = vrot.lane.b32.xlu0 %v412_v57, %s2165_s12 }
  0x8e   : > { %508 = vrot.lane.b32.xlu1 %v392_v62, %s2164_s30 }
  0x91   : > { %664 = vrot.lane.b32.xlu0 %v453_v2, %s2166_s14 }
  0x92   : > { %510 = vrot.lane.b32.xlu1 %v374_v3, %s2164_s30 }
  0x95   : > { %666 = vrot.lane.b32.xlu0 %v473_v4, %s2166_s14 }
  0x96   : > { %558 = vrot.lane.b32.xlu1 %v2511_v56, %s2163_s24 }
  0x99   : > { %556 = vrot.lane.b32.xlu0 %v2502_v51, %s2163_s24 }
  0x9a   : > { %614 = vrot.lane.b32.xlu1 %v433_v9, %s2165_s12 }
  0x9d   : > { %612 = vrot.lane.b32.xlu0 %v415_v12, %s2165_s12 }
  0x9e   : > { %512 = vrot.lane.b32.xlu1 %v393_v17, %s2164_s30 }
  0xa1   : > { %668 = vrot.lane.b32.xlu0 %v456_v20, %s2166_s14 }
  0xa2   : > { %514 = vrot.lane.b32.xlu1 %v377_v22, %s2164_s30  ;;  %v347_v22 = vsel %vm304_vm3, 0.0, %v311_v49 }
  0xa4   : > { %v533_v25 = vpop.permute.xlu1 %532 }
  0xa5   : > { %670 = vrot.lane.b32.xlu0 %v474_v23, %s2166_s14 }
  0xa6   : > { %562 = vrot.lane.b32.xlu1 %v2539_v11, %s2163_s24 }
  0xa7   : > { %v485_v27 = vpop.permute.xlu0 %484 }
  0xa8   : > { %v535_v30 = vpop.permute.xlu1 %534  ;;  %v693_v42 = vsel %vm692_vm4, %v345_v38, %v485_v27 }
  0xa9   : > { %560 = vrot.lane.b32.xlu0 %v2530_v7, %s2163_s24  ;;  %v710_v0 = vsel %vm709_vm5, %v693_v42, %v533_v25 }
  0xaa   : > { %618 = vrot.lane.b32.xlu1 %v434_v28, %s2165_s12 }
  0xab   : > { %v487_v35 = vpop.permute.xlu0 %486 }
  0xac   : > { %v591_v39 = vpop.permute.xlu1 %590  ;;  %v694_v46 = vsel %vm692_vm4, %v2380_v40, %v487_v35 }
  0xad   : > { %616 = vrot.lane.b32.xlu0 %v418_v31, %s2165_s12  ;;  %v711_v50 = vsel %vm709_vm5, %v694_v46, %v535_v30 }
  0xae   : > { %674 = vrot.lane.b32.xlu1 %v475_v36, %s2166_s14  ;;  %v728_v54 = vsel %vm726_vm7, %v711_v50, %v591_v39  ;;  %v348_v39 = vsel %vm304_vm3, 0.0, %v314_v61 }
  0xaf   : > { %v589_v44 = vpop.permute.xlu0 %588 }
  0xb0   : > { %v489_v45 = vpop.permute.xlu1 %488  ;;  %v727_v32 = vsel %vm726_vm7, %v710_v0, %v589_v44 }
  0xb1   : > { %672 = vrot.lane.b32.xlu0 %v459_v41, %s2166_s14  ;;  %v695_v4 = vsel %vm692_vm4, %v346_v63, %v489_v45 }
  0xb3   : > { %v645_v48 = vpop.permute.xlu0 %644 }
  0xb4   : > { %v491_v52 = vpop.permute.xlu1 %490  ;;  %v744_v53 = vsel %vm743_vm6, %v727_v32, %v645_v48 }
  0xb5   : > { %1909 = vmatprep.mubr.msk.f32.mxu0 %vm777_vm8, %v744_v53  ;;  %v696_v8 = vsel %vm692_vm4, %v2395_v47, %v491_v52 }
  0xb7   : > { %v647_v40 = vpop.permute.xlu0 %646 }
  0xb8   : > { %v745_v57 = vsel %vm743_vm6, %v728_v54, %v647_v40  ;;  %v539_v59 = vpop.permute.xlu1 %538 }
  0xb9   : > { %1910 = vmatmul.mubr.msk.f32.vlgmr.msra.gmra.mrb[0].mxu0 %vm777_vm8, %v745_v57  ;;  %v713_v6 = vsel %vm709_vm5, %v696_v8, %v539_v59  ;;  %v349_v57 = vsel %vm304_vm3, 0.0, %v317_v16 }
  0xbb   : > { %v537_v60 = vpop.permute.xlu0 %536 }
  0xbc   : > { %v595_v62 = vpop.permute.xlu1 %594  ;;  %v712_v5 = vsel %vm709_vm5, %v695_v4, %v537_v60 }
  0xbd   : > { %v730_v43 = vsel %vm726_vm7, %v713_v6, %v595_v62  ;;  %v321_v6 = vrot.slane %v2484_v37, 6 }
  0xbf   : > { %v593_v2 = vpop.permute.xlu0 %592 }
  0xc0   : > { %v493_v3 = vpop.permute.xlu1 %492  ;;  %v729_v9 = vsel %vm726_vm7, %v712_v5, %v593_v2 }
  0xc1   : > { %v697_v25 = vsel %vm692_vm4, %v347_v22, %v493_v3 }
  0xc3   : > { %v649_v10 = vpop.permute.xlu0 %648 }
  0xc4   : > { %v746_v12 = vsel %vm743_vm6, %v729_v9, %v649_v10  ;;  %v495_v13 = vpop.permute.xlu1 %494 }
  0xc5   : > { %1912 = vmatprep.mubr.msk.f32.mxu0 %vm777_vm8, %v746_v12  ;;  %v698_v27 = vsel %vm692_vm4, %v2411_v55, %v495_v13 }
  0xc7   : > { %v651_v15 = vpop.permute.xlu0 %650 }
  0xc8   : > { %v747_v17 = vsel %vm743_vm6, %v730_v43, %v651_v15  ;;  %v543_v18 = vpop.permute.xlu1 %542 }
  0xc9   : > { %1913 = vmatmul.mubr.msk.f32.gmra.mrb[2].mxu0 %vm777_vm8, %v747_v17  ;;  %v715_v21 = vsel %vm709_vm5, %v698_v27, %v543_v18 }
  0xcb   : > { %v541_v20 = vpop.permute.xlu0 %540 }
  0xcc   : > { %v599_v47 = vpop.permute.xlu1 %598  ;;  %v714_v26 = vsel %vm709_vm5, %v697_v25, %v541_v20 }
  0xcd   : > { %v732_v49 = vsel %vm726_vm7, %v715_v21, %v599_v47 }
  0xcf   : > { %v597_v23 = vpop.permute.xlu0 %596 }
  0xd0   : > { %v497_v24 = vpop.permute.xlu1 %496  ;;  %v731_v28 = vsel %vm726_vm7, %v714_v26, %v597_v23 }
  0xd1   : > { %v699_v44 = vsel %vm692_vm4, %v348_v39, %v497_v24 }
  0xd3   : > { %v653_v29 = vpop.permute.xlu0 %652 }
  0xd4   : > { %v748_v30 = vsel %vm743_vm6, %v731_v28, %v653_v29  ;;  %v499_v31 = vpop.permute.xlu1 %498 }
  0xd5   : > { %1915 = vmatprep.mubr.msk.f32.mxu0 %vm777_vm8, %v748_v30  ;;  %v700_v46 = vsel %vm692_vm4, %v2429_v1, %v499_v31  ;;  %v323_v31 = vrot.slane %v2502_v51, 6 }
  0xd7   : > { %v655_v34 = vpop.permute.xlu0 %654 }
  0xd8   : > { %v749_v35 = vsel %vm743_vm6, %v732_v49, %v655_v34  ;;  %v547_v36 = vpop.permute.xlu1 %546  ;;  %v324_v49 = vrot.slane %v2511_v56, 6 }
  0xd9   : > { %1916 = vmatmul.mubr.msk.f32.gmra.mrb[4].mxu0 %vm777_vm8, %v749_v35  ;;  %v717_v58 = vsel %vm709_vm5, %v700_v46, %v547_v36  ;;  %v1019_v35 = vld [vmem:[%s2877_s3] sm:$0xff]  ;;  %v1020_v36 = vld [vmem:[%s2877_s3 + $0x8] sm:$0xff] }
  0xdb   : > { %v545_v38 = vpop.permute.xlu0 %544 }
  0xdc   : > { %v603_v55 = vpop.permute.xlu1 %602  ;;  %v716_v45 = vsel %vm709_vm5, %v699_v44, %v545_v38  ;;  %v351_v38 = vsel %vm304_vm3, 0.0, %v323_v31 }
  0xdd   : > { %v734_v61 = vsel %vm726_vm7, %v717_v58, %v603_v55  ;;  %v1988_v55 = vpack.c.bf16 %v1020_v36, %v1019_v35 }
  0xdf   : > { %v601_v41 = vpop.permute.xlu0 %600  ;;  %1989 = vmatprep.subr.bf16.mxu1 %v1988_v55 }
  0xe0   : > { %v501_v42 = vpop.permute.xlu1 %500  ;;  %v733_v0 = vsel %vm726_vm7, %v716_v45, %v601_v41  ;;  %v325_v41 = vsel %vm304_vm3, %v323_v31, %v324_v49  ;;  %1991 = vmatpush3.bf16.msra.mxu1 %v1988_v55 }
  0xe1   : > { %v701_v62 = vsel %vm692_vm4, %v349_v57, %v501_v42 }
  0xe3   : > { %v657_v32 = vpop.permute.xlu0 %656 }
  0xe4   : > { %v750_v48 = vsel %vm743_vm6, %v733_v0, %v657_v32  ;;  %v503_v50 = vpop.permute.xlu1 %502 }
  0xe5   : > { %1918 = vmatprep.mubr.msk.f32.mxu0 %vm777_vm8, %v750_v48  ;;  %v702_v2 = vsel %vm692_vm4, %v2458_v19, %v503_v50  ;;  %v320_v19 = vrot.slane %v2476_v33, 6 }
  0xe7   : > { %v659_v52 = vpop.permute.xlu0 %658  ;;  %v350_v15 = vsel %vm304_vm3, 0.0, %v320_v19  ;;  %v322_v18 = vsel %vm304_vm3, %v320_v19, %v321_v6 }
  0xe8   : > { %v751_v53 = vsel %vm743_vm6, %v734_v61, %v659_v52  ;;  %v551_v54 = vpop.permute.xlu1 %550 }
  0xe9   : > { %1919 = vmatmul.mubr.msk.f32.gmra.mrb[6].mxu0 %vm777_vm8, %v751_v53  ;;  %v719_v14 = vsel %vm709_vm5, %v702_v2, %v551_v54  ;;  %v327_v53 = vrot.slane %v2539_v11, 6  ;;  %v326_v54 = vrot.slane %v2530_v7, 6 }
  0xeb   : > { %v549_v40 = vpop.permute.xlu0 %548  ;;  %v328_v57 = vsel %vm304_vm3, %v326_v54, %v327_v53 }
  0xec   : > { %v607_v1 = vpop.permute.xlu1 %606  ;;  %v718_v63 = vsel %vm709_vm5, %v701_v62, %v549_v40 }
  0xed   : > { %v736_v16 = vsel %vm726_vm7, %v719_v14, %v607_v1 }
  0xef   : > { %v605_v59 = vpop.permute.xlu0 %604 }
  0xf0   : > { %v505_v60 = vpop.permute.xlu1 %504  ;;  %v735_v3 = vsel %vm726_vm7, %v718_v63, %v605_v59  ;;  %v352_v59 = vsel %vm304_vm3, 0.0, %v326_v54 }
  0xf1   : > { %v703_v47 = vsel %vm692_vm4, %v350_v15, %v505_v60 }
  0xf3   : > { %v661_v4 = vpop.permute.xlu0 %660 }
  0xf4   : > { %v752_v5 = vsel %vm743_vm6, %v735_v3, %v661_v4  ;;  %v507_v8 = vpop.permute.xlu1 %506 }
  0xf5   : > { %1921 = vmatprep.mubr.msk.f32.mxu0 %vm777_vm8, %v752_v5  ;;  %v704_v23 = vsel %vm692_vm4, %v322_v18, %v507_v8 }
  0xf7   : > { %v663_v9 = vpop.permute.xlu0 %662 }
  0xf8   : > { %v753_v10 = vsel %vm743_vm6, %v736_v16, %v663_v9  ;;  %v555_v12 = vpop.permute.xlu1 %554  ;;  %v2694_v16 = vld [vmem:[%s2876_s2] ss:$0 sm:$0xff] }
  0xf9   : > { %1922 = vmatmul.mubr.msk.f32.gmra.mrb[8].mxu0 %vm777_vm8, %v753_v10  ;;  %v721_v37 = vsel %vm709_vm5, %v704_v23, %v555_v12 }
  0xfb   : > { %v553_v13 = vpop.permute.xlu0 %552 }
  0xfc   : > { %v611_v43 = vpop.permute.xlu1 %610  ;;  %v720_v22 = vsel %vm709_vm5, %v703_v47, %v553_v13 }
  0xfd   : > { %v738_v27 = vsel %vm726_vm7, %v721_v37, %v611_v43 }
  0xff   : > { %v609_v17 = vpop.permute.xlu0 %608 }
 0x100   : > { %v509_v20 = vpop.permute.xlu1 %508  ;;  %v737_v24 = vsel %vm726_vm7, %v720_v22, %v609_v17 }
 0x101   : > { %v705_v51 = vsel %vm692_vm4, %v351_v38, %v509_v20 }
 0x103   : > { %v665_v25 = vpop.permute.xlu0 %664 }
 0x104   : > { %v754_v33 = vsel %vm743_vm6, %v737_v24, %v665_v25  ;;  %v511_v26 = vpop.permute.xlu1 %510 }
 0x105   : > { %1924 = vmatprep.mubr.msk.f32.mxu0 %vm777_vm8, %v754_v33  ;;  %v706_v44 = vsel %vm692_vm4, %v325_v41, %v511_v26 }
 0x107   : > { %v667_v28 = vpop.permute.xlu0 %666 }
 0x108   : > { %v755_v29 = vsel %vm743_vm6, %v738_v27, %v667_v28  ;;  %v559_v30 = vpop.permute.xlu1 %558 }
 0x109   : > { %1925 = vmatmul.mubr.msk.f32.gmra.mrb[10].mxu0 %vm777_vm8, %v755_v29  ;;  %v723_v48 = vsel %vm709_vm5, %v706_v44, %v559_v30 }
 0x10b   : > { %v557_v21 = vpop.permute.xlu0 %556 }
 0x10c   : > { %v615_v34 = vpop.permute.xlu1 %614  ;;  %v722_v56 = vsel %vm709_vm5, %v705_v51, %v557_v21 }
 0x10d   : > { %v740_v50 = vsel %vm726_vm7, %v723_v48, %v615_v34 }
 0x10f   : > { %v613_v39 = vpop.permute.xlu0 %612 }
 0x110   : > { %v513_v42 = vpop.permute.xlu1 %512  ;;  %v739_v45 = vsel %vm726_vm7, %v722_v56, %v613_v39 }
 0x111   : > { %v707_v63 = vsel %vm692_vm4, %v352_v59, %v513_v42 }
 0x113   : > { %v669_v46 = vpop.permute.xlu0 %668 }
 0x114   : > { %v756_v0 = vsel %vm743_vm6, %v739_v45, %v669_v46  ;;  %v515_v32 = vpop.permute.xlu1 %514 }
 0x115   : > { %1927 = vmatprep.mubr.msk.f32.mxu0 %vm777_vm8, %v756_v0  ;;  %v708_v62 = vsel %vm692_vm4, %v328_v57, %v515_v32 }
 0x117   : > { %v671_v58 = vpop.permute.xlu0 %670 }
 0x118   : > { %v757_v61 = vsel %vm743_vm6, %v740_v50, %v671_v58  ;;  %v563_v52 = vpop.permute.xlu1 %562 }
 0x119   : > { %1928 = vmatmul.mubr.msk.f32.gmra.mrb[12].mxu0 %vm777_vm8, %v757_v61  ;;  %v725_v11 = vsel %vm709_vm5, %v708_v62, %v563_v52 }
 0x11b   : > { %v561_v40 = vpop.permute.xlu0 %560 }
 0x11c   : > { %v619_v1 = vpop.permute.xlu1 %618  ;;  %v724_v2 = vsel %vm709_vm5, %v707_v63, %v561_v40 }
 0x11d   : > { %v742_v7 = vsel %vm726_vm7, %v725_v11, %v619_v1 }
 0x11f   : > { %v617_v60 = vpop.permute.xlu0 %616 }
 0x120   : > { %v675_v3 = vpop.permute.xlu1 %674  ;;  %v741_v4 = vsel %vm726_vm7, %v724_v2, %v617_v60 }
 0x121   : > { %v759_v14 = vsel %vm743_vm6, %v742_v7, %v675_v3 }
 0x123   : > { %v673_v5 = vpop.permute.xlu0 %672 }
 0x124   : > { %v758_v8 = vsel %vm743_vm6, %v741_v4, %v673_v5 }
 0x125   : > { %1930 = vmatprep.mubr.msk.f32.mxu0 %vm777_vm8, %v758_v8 }
 0x126   : > { %1931 = vmatmul.mubr.msk.f32.gmra.mrb[14].mxu0 %vm777_vm8, %v759_v14 }
 0x18c   : > { %v1911_v9 = vpop.f32.mrb[0].mxu0 }
 0x18d   : > { %v898_v10 = vadd.f32 %v1911_v9, %v2694_v16  ;;  %v892_v12 = vpop.f32.mrb[1].mxu0 }
 0x18e   : > { %v893_v19 = vadd.f32 %v2694_v16, %v892_v12 }
 0x18f   : > { %v988_v13 = vmul.f32 0.01, %v898_v10  ;;  %vm972_vm9 = vcmp.ge.f32.partialorder %v898_v10, 0.0 }
 0x190   : > { %vm971_vm10 = vcmp.ge.f32.partialorder %v893_v19, 0.0  ;;  %v987_v6 = vmul.f32 0.01, %v893_v19 }
 0x191   : > { %v2702_v15 = vsel %vm972_vm9, %v898_v10, %v988_v13  ;;  %v2167_v10 = vmov 0  }
 0x192   : > { %v2698_v43 = vsel %vm971_vm10, %v893_v19, %v987_v6  ;;  %2045 = vset.pattern.permute.xlu1 %v2167_v10  ;;  %2044 = vset.pattern.permute.xlu0 %v2167_v10  ;;  %vm1214_vm10 = vcmask 7168  }
 0x193   : > { %1937 = vmatprep.mubr.msk.f32.mxu1 %vm692_vm4, %v2698_v43 }
 0x194   : > { %1938 = vmatmul.mubr.msk.f32.vlgmr.msra.gmra.mrb[0].mxu1 %vm692_vm4, %v2702_v15 }
 0x19c   : > { %v1914_v17 = vpop.f32.mrb[2].mxu0 }
 0x19d   : > { %v908_v18 = vadd.f32 %v1914_v17, %v2694_v16  ;;  %v902_v20 = vpop.f32.mrb[3].mxu0 }
 0x19e   : > { %v903_v47 = vadd.f32 %v2694_v16, %v902_v20 }
 0x19f   : > { %v990_v22 = vmul.f32 0.01, %v908_v18  ;;  %vm974_vm11 = vcmp.ge.f32.partialorder %v908_v18, 0.0 }
 0x1a0   : > { %vm973_vm12 = vcmp.ge.f32.partialorder %v903_v47, 0.0  ;;  %v989_v23 = vmul.f32 0.01, %v903_v47 }
 0x1a1   : > { %v2712_v25 = vsel %vm974_vm11, %v908_v18, %v990_v22  ;;  %vm2169_vm11 = vmmov 0  }
 0x1a2   : > { %v2708_v24 = vsel %vm973_vm12, %v903_v47, %v989_v23  ;;  %vm1640_vm12 = vcmask 1041409  }
 0x1a3   : > { %1940 = vmatprep.mubr.msk.f32.mxu1 %vm692_vm4, %v2708_v24 }
 0x1a4   : > { %1941 = vmatmul.mubr.msk.f32.gmra.mrb[2].mxu1 %vm692_vm4, %v2712_v25 }
 0x1ac   : > { %v1917_v33 = vpop.f32.mrb[4].mxu0 }
 0x1ad   : > { %v918_v26 = vadd.f32 %v1917_v33, %v2694_v16  ;;  %v912_v37 = vpop.f32.mrb[5].mxu0 }
 0x1ae   : > { %v913_v27 = vadd.f32 %v2694_v16, %v912_v37 }
 0x1af   : > { %v992_v28 = vmul.f32 0.01, %v918_v26  ;;  %vm976_vm13 = vcmp.ge.f32.partialorder %v918_v26, 0.0 }
 0x1b0   : > { %vm975_vm14 = vcmp.ge.f32.partialorder %v913_v27, 0.0  ;;  %v991_v29 = vmul.f32 0.01, %v913_v27 }
 0x1b1   : > { %v2722_v31 = vsel %vm976_vm13, %v918_v26, %v992_v28 }
 0x1b2   : > { %v2718_v30 = vsel %vm975_vm14, %v913_v27, %v991_v29 }
 0x1b3   : > { %1943 = vmatprep.mubr.msk.f32.mxu1 %vm692_vm4, %v2718_v30 }
 0x1b4   : > { %1944 = vmatmul.mubr.msk.f32.gmra.mrb[4].mxu1 %vm692_vm4, %v2722_v31 }
 0x1bc   : > { %v1920_v21 = vpop.f32.mrb[6].mxu0 }
 0x1bd   : > { %v928_v49 = vadd.f32 %v1920_v21, %v2694_v16  ;;  %v922_v34 = vpop.f32.mrb[7].mxu0 }
 0x1be   : > { %v923_v35 = vadd.f32 %v2694_v16, %v922_v34 }
 0x1bf   : > { %v994_v36 = vmul.f32 0.01, %v928_v49  ;;  %vm978_vm15 = vcmp.ge.f32.partialorder %v928_v49, 0.0 }
 0x1c0   : > { %vm977_vm0 = vcmp.ge.f32.partialorder %v923_v35, 0.0  ;;  %v993_v38 = vmul.f32 0.01, %v923_v35 }
 0x1c1   : > { %v2732_v39 = vsel %vm978_vm15, %v928_v49, %v994_v36 }
 0x1c2   : > { %v2728_v55 = vsel %vm977_vm0, %v923_v35, %v993_v38  ;;  %vm1642_vm0 = vcmask 1042434  }
 0x1c3   : > { %1946 = vmatprep.mubr.msk.f32.mxu1 %vm692_vm4, %v2728_v55 }
 0x1c4   : > { %1947 = vmatmul.mubr.msk.f32.gmra.mrb[6].mxu1 %vm692_vm4, %v2732_v39 }
 0x1cc   : > { %v1923_v41 = vpop.f32.mrb[8].mxu0 }
 0x1cd   : > { %v938_v42 = vadd.f32 %v1923_v41, %v2694_v16  ;;  %v932_v51 = vpop.f32.mrb[9].mxu0 }
 0x1ce   : > { %v933_v56 = vadd.f32 %v2694_v16, %v932_v51 }
 0x1cf   : > { %v996_v44 = vmul.f32 0.01, %v938_v42  ;;  %vm980_vm1 = vcmp.ge.f32.partialorder %v938_v42, 0.0 }
 0x1d0   : > { %vm979_vm2 = vcmp.ge.f32.partialorder %v933_v56, 0.0  ;;  %v995_v45 = vmul.f32 0.01, %v933_v56 }
 0x1d1   : > { %v2742_v0 = vsel %vm980_vm1, %v938_v42, %v996_v44 }
 0x1d2   : > { %v2738_v46 = vsel %vm979_vm2, %v933_v56, %v995_v45 }
 0x1d3   : > { %1949 = vmatprep.mubr.msk.f32.mxu1 %vm692_vm4, %v2738_v46 }
 0x1d4   : > { %1950 = vmatmul.mubr.msk.f32.gmra.mrb[8].mxu1 %vm692_vm4, %v2742_v0 }
 0x1dc   : > { %v1926_v32 = vpop.f32.mrb[10].mxu0 }
 0x1dd   : > { %v948_v48 = vadd.f32 %v1926_v32, %v2694_v16  ;;  %v942_v50 = vpop.f32.mrb[11].mxu0 }
 0x1de   : > { %v943_v58 = vadd.f32 %v2694_v16, %v942_v50 }
 0x1df   : > { %v998_v61 = vmul.f32 0.01, %v948_v48  ;;  %vm982_vm3 = vcmp.ge.f32.partialorder %v948_v48, 0.0 }
 0x1e0   : > { %vm981_vm5 = vcmp.ge.f32.partialorder %v943_v58, 0.0  ;;  %v997_v52 = vmul.f32 0.01, %v943_v58 }
 0x1e1   : > { %v2752_v54 = vsel %vm982_vm3, %v948_v48, %v998_v61  ;;  %vm1644_vm3 = vcmask 1043459  }
 0x1e2   : > { %v2748_v53 = vsel %vm981_vm5, %v943_v58, %v997_v52 }
 0x1e3   : > { %1952 = vmatprep.mubr.msk.f32.mxu1 %vm692_vm4, %v2748_v53 }
 0x1e4   : > { %1953 = vmatmul.mubr.msk.f32.gmra.mrb[10].mxu1 %vm692_vm4, %v2752_v54 }
 0x1ec   : > { %v1929_v40 = vpop.f32.mrb[12].mxu0 }
 0x1ed   : > { %v958_v1 = vadd.f32 %v1929_v40, %v2694_v16  ;;  %v952_v57 = vpop.f32.mrb[13].mxu0 }
 0x1ee   : > { %v953_v59 = vadd.f32 %v2694_v16, %v952_v57 }
 0x1ef   : > { %v1000_v60 = vmul.f32 0.01, %v958_v1  ;;  %vm984_vm6 = vcmp.ge.f32.partialorder %v958_v1, 0.0 }
 0x1f0   : > { %vm983_vm7 = vcmp.ge.f32.partialorder %v953_v59, 0.0  ;;  %v999_v62 = vmul.f32 0.01, %v953_v59 }
 0x1f1   : > { %v2762_v2 = vsel %vm984_vm6, %v958_v1, %v1000_v60 }
 0x1f2   : > { %v2758_v63 = vsel %vm983_vm7, %v953_v59, %v999_v62  ;;  %vm1646_vm7 = vcmask 1044484  }
 0x1f3   : > { %1955 = vmatprep.mubr.msk.f32.mxu1 %vm692_vm4, %v2758_v63 }
 0x1f4   : > { %1956 = vmatmul.mubr.msk.f32.gmra.mrb[12].mxu1 %vm692_vm4, %v2762_v2 }
 0x1f9   : > { %v1932_v3 = vpop.f32.mrb[14].mxu0 }
 0x1fa   : > { %v968_v11 = vadd.f32 %v1932_v3, %v2694_v16  ;;  %v962_v4 = vpop.f32.mrb[15].mxu0 }
 0x1fb   : > { %v963_v5 = vadd.f32 %v2694_v16, %v962_v4 }
 0x1fc   : > { %v1002_v7 = vmul.f32 0.01, %v968_v11  ;;  %vm986_vm8 = vcmp.ge.f32.partialorder %v968_v11, 0.0 }
 0x1fd   : > { %vm985_vm9 = vcmp.ge.f32.partialorder %v963_v5, 0.0  ;;  %v1001_v8 = vmul.f32 0.01, %v963_v5 }
 0x1fe   : > { %v2772_v9 = vsel %vm986_vm8, %v968_v11, %v1002_v7  ;;  %vm1648_vm8 = vcmask 1045509  }
 0x1ff   : > { %v2768_v14 = vsel %vm985_vm9, %v963_v5, %v1001_v8  ;;  %vm1650_vm9 = vcmask 1046534  }
 0x200   : > { %1958 = vmatprep.mubr.msk.f32.mxu1 %vm692_vm4, %v2768_v14 }
 0x201   : > { %1959 = vmatmul.mubr.msk.f32.gmra.mrb[14].mxu1 %vm692_vm4, %v2772_v9 }
 0x267   : > { %v1939_v12 = vpop.f32.mrb[0].mxu1 }
 0x268   : > { %v1216_v16 = vsel %vm1214_vm10, %v1939_v12, -inf  ;;  %v1135_v19 = vpop.f32.mrb[1].mxu1 }
 0x269   : > { %v1215_v13 = vsel %vm1214_vm10, %v1135_v19, -inf }
 0x26a   : > { %v1217_v6 = vmax.f32 %v1215_v13, %v1216_v16 }
 0x26c   : > { %v1218_v17 = vrot.slane %v1217_v6, 4 }
 0x26e   : > { %v1219_v18 = vmax.f32 %v1217_v6, %v1218_v17 }
 0x270   : > { %v1220_v20 = vrot.slane %v1219_v18, 2 }
 0x272   : > { %v1221_v47 = vmax.f32 %v1219_v18, %v1220_v20 }
 0x274   : > { %v1222_v22 = vrot.slane %v1221_v47, 1 }
 0x276   : > { %v1223_v23 = vmax.f32 %v1221_v47, %v1222_v22 }
 0x277   : > { %v1942_v33 = vpop.f32.mrb[2].mxu1 }
 0x278   : > { %v1287_v26 = vsub.f32 %v1135_v19, %v1223_v23  ;;  %v1288_v37 = vsub.f32 %v1939_v12, %v1223_v23  ;;  %v1225_v27 = vsel %vm1214_vm10, %v1942_v33, -inf  ;;  %v1145_v28 = vpop.f32.mrb[3].mxu1 }
 0x279   : > { %v1224_v29 = vsel %vm1214_vm10, %v1145_v28, -inf }
 0x27a   : > { %v1303_v21 = vmul.f32 1.442695, %v1287_v26  ;;  %v1305_v49 = vmul.f32 1.442695, %v1288_v37  ;;  %v1226_v34 = vmax.f32 %v1224_v29, %v1225_v27 }
 0x27c   : > { %2046 = vpow2.f32 %v1303_v21  ;;  %v1227_v35 = vrot.slane %v1226_v34, 4 }
 0x27d   : > { %2048 = vpow2.f32 %v1305_v49 }
 0x27e   : > { %v1228_v36 = vmax.f32 %v1226_v34, %v1227_v35 }
 0x280   : > { %v1229_v38 = vrot.slane %v1228_v36, 2 }
 0x282   : > { %v1230_v41 = vmax.f32 %v1228_v36, %v1229_v38 }
 0x284   : > { %v1231_v42 = vrot.slane %v1230_v41, 1 }
 0x286   : > { %v2047_v51 = vpop.eup %2046  ;;  %v1232_v56 = vmax.f32 %v1230_v41, %v1231_v42 }
 0x287   : > { %v2049_v44 = vpop.eup %2048  ;;  %v1335_v45 = vsel %vm1214_vm10, %v2047_v51, 0.0  ;;  %v1945_v32 = vpop.f32.mrb[4].mxu1 }
 0x288   : > { %v1336_v48 = vsel %vm1214_vm10, %v2049_v44, 0.0  ;;  %v1289_v50 = vsub.f32 %v1145_v28, %v1232_v56  ;;  %v1290_v58 = vsub.f32 %v1942_v33, %v1232_v56  ;;  %v1234_v61 = vsel %vm1214_vm10, %v1945_v32, -inf  ;;  %v1155_v52 = vpop.f32.mrb[5].mxu1 }
 0x289   : > { %v1337_v40 = vadd.f32 %v1336_v48, %v1335_v45  ;;  %v1233_v1 = vsel %vm1214_vm10, %v1155_v52, -inf }
 0x28a   : > { %v1307_v57 = vmul.f32 1.442695, %v1289_v50  ;;  %v1309_v59 = vmul.f32 1.442695, %v1290_v58  ;;  %v1235_v60 = vmax.f32 %v1233_v1, %v1234_v61 }
 0x28b   : > { %v1338_v62 = vrot.slane %v1337_v40, 4 }
 0x28c   : > { %2050 = vpow2.f32 %v1307_v57  ;;  %v1236_v3 = vrot.slane %v1235_v60, 4 }
 0x28d   : > { %v1339_v11 = vadd.f32 %v1338_v62, %v1337_v40  ;;  %2052 = vpow2.f32 %v1309_v59 }
 0x28e   : > { %v1237_v4 = vmax.f32 %v1235_v60, %v1236_v3 }
 0x28f   : > { %v1340_v5 = vrot.slane %v1339_v11, 2 }
 0x290   : > { %v1238_v7 = vrot.slane %v1237_v4, 2 }
 0x291   : > { %v1341_v8 = vadd.f32 %v1340_v5, %v1339_v11 }
 0x292   : > { %v1239_v10 = vmax.f32 %v1237_v4, %v1238_v7 }
 0x293   : > { %v1342_v12 = vrot.slane %v1341_v8, 1 }
 0x294   : > { %v1240_v16 = vrot.slane %v1239_v10, 1 }
 0x295   : > { %v1343_v19 = vadd.f32 %v1342_v12, %v1341_v8 }
 0x296   : > { %v2051_v13 = vpop.eup %2050  ;;  %v1241_v6 = vmax.f32 %v1239_v10, %v1240_v16 }
 0x297   : > { %v2053_v17 = vpop.eup %2052  ;;  %v1344_v18 = vsel %vm1214_vm10, %v2051_v13, 0.0  ;;  %v1948_v20 = vpop.f32.mrb[6].mxu1  ;;  %2054 = vrcp.f32 %v1343_v19 }
 0x298   : > { %v1345_v47 = vsel %vm1214_vm10, %v2053_v17, 0.0  ;;  %v1291_v22 = vsub.f32 %v1155_v52, %v1241_v6  ;;  %v1292_v23 = vsub.f32 %v1945_v32, %v1241_v6  ;;  %v1243_v33 = vsel %vm1214_vm10, %v1948_v20, -inf  ;;  %v1165_v26 = vpop.f32.mrb[7].mxu1 }
 0x299   : > { %v1346_v37 = vadd.f32 %v1345_v47, %v1344_v18  ;;  %v1242_v27 = vsel %vm1214_vm10, %v1165_v26, -inf }
 0x29a   : > { %v1311_v28 = vmul.f32 1.442695, %v1291_v22  ;;  %v1313_v29 = vmul.f32 1.442695, %v1292_v23  ;;  %v1244_v21 = vmax.f32 %v1242_v27, %v1243_v33 }
 0x29b   : > { %v1347_v49 = vrot.slane %v1346_v37, 4 }
 0x29c   : > { %2056 = vpow2.f32 %v1311_v28  ;;  %v1245_v34 = vrot.slane %v1244_v21, 4 }
 0x29d   : > { %v1348_v35 = vadd.f32 %v1347_v49, %v1346_v37  ;;  %2058 = vpow2.f32 %v1313_v29 }
 0x29e   : > { %v1246_v36 = vmax.f32 %v1244_v21, %v1245_v34 }
 0x29f   : > { %v1349_v38 = vrot.slane %v1348_v35, 2 }
 0x2a0   : > { %v1247_v41 = vrot.slane %v1246_v36, 2 }
 0x2a1   : > { %v2055_v42 = vpop.eup %2054  ;;  %v1350_v56 = vadd.f32 %v1349_v38, %v1348_v35 }
 0x2a2   : > { %v1248_v45 = vmax.f32 %v1246_v36, %v1247_v41  ;;  %v1416_v32 = vmul.f32 %v2055_v42, %v2049_v44  ;;  %v1415_v48 = vmul.f32 %v2055_v42, %v2047_v51 }
 0x2a3   : > { %v1351_v50 = vrot.slane %v1350_v56, 1 }
 0x2a4   : > { %v1249_v58 = vrot.slane %v1248_v45, 1  ;;  %1438 = vperm.xlu1 %2045, %v1416_v32   ;;  %1433 = vperm.xlu0 %2044, %v1415_v48  }
 0x2a5   : > { %v1352_v61 = vadd.f32 %v1351_v50, %v1350_v56 }
 0x2a6   : > { %v2057_v52 = vpop.eup %2056  ;;  %v1250_v40 = vmax.f32 %v1248_v45, %v1249_v58 }
 0x2a7   : > { %v2059_v1 = vpop.eup %2058  ;;  %v1353_v57 = vsel %vm1214_vm10, %v2057_v52, 0.0  ;;  %v1951_v59 = vpop.f32.mrb[8].mxu1  ;;  %2060 = vrcp.f32 %v1352_v61 }
 0x2a8   : > { %v1354_v60 = vsel %vm1214_vm10, %v2059_v1, 0.0  ;;  %v1293_v62 = vsub.f32 %v1165_v26, %v1250_v40  ;;  %v1294_v3 = vsub.f32 %v1948_v20, %v1250_v40  ;;  %v1252_v11 = vsel %vm1214_vm10, %v1951_v59, -inf  ;;  %v1175_v44 = vpop.f32.mrb[9].mxu1 }
 0x2a9   : > { %v1355_v51 = vadd.f32 %v1354_v60, %v1353_v57  ;;  %v1251_v4 = vsel %vm1214_vm10, %v1175_v44, -inf }
 0x2aa   : > { %v1315_v5 = vmul.f32 1.442695, %v1293_v62  ;;  %v1317_v7 = vmul.f32 1.442695, %v1294_v3  ;;  %v1253_v8 = vmax.f32 %v1251_v4, %v1252_v11 }
 0x2ab   : > { %v1356_v10 = vrot.slane %v1355_v51, 4 }
 0x2ac   : > { %2062 = vpow2.f32 %v1315_v5  ;;  %v1254_v12 = vrot.slane %v1253_v8, 4 }
 0x2ad   : > { %v1357_v16 = vadd.f32 %v1356_v10, %v1355_v51  ;;  %2064 = vpow2.f32 %v1317_v7 }
 0x2ae   : > { %v1255_v19 = vmax.f32 %v1253_v8, %v1254_v12 }
 0x2af   : > { %v1358_v6 = vrot.slane %v1357_v16, 2 }
 0x2b0   : > { %v1256_v18 = vrot.slane %v1255_v19, 2 }
 0x2b1   : > { %v2061_v47 = vpop.eup %2060  ;;  %v1359_v22 = vadd.f32 %v1358_v6, %v1357_v16 }
 0x2b2   : > { %v1257_v20 = vmax.f32 %v1255_v19, %v1256_v18  ;;  %v1418_v23 = vmul.f32 %v2061_v47, %v2053_v17  ;;  %v1417_v33 = vmul.f32 %v2061_v47, %v2051_v13 }
 0x2b3   : > { %v1360_v26 = vrot.slane %v1359_v22, 1 }
 0x2b4   : > { %v1258_v37 = vrot.slane %v1257_v20, 1  ;;  %1448 = vperm.xlu0 %2044, %v1418_v23   ;;  %1443 = vperm.xlu1 %2045, %v1417_v33  }
 0x2b5   : > { %v1361_v27 = vadd.f32 %v1360_v26, %v1359_v22 }
 0x2b6   : > { %v2063_v28 = vpop.eup %2062  ;;  %v1259_v29 = vmax.f32 %v1257_v20, %v1258_v37 }
 0x2b7   : > { %v2065_v21 = vpop.eup %2064  ;;  %v1362_v49 = vsel %vm1214_vm10, %v2063_v28, 0.0  ;;  %v1954_v34 = vpop.f32.mrb[10].mxu1  ;;  %2066 = vrcp.f32 %v1361_v27 }
 0x2b8   : > { %v1363_v35 = vsel %vm1214_vm10, %v2065_v21, 0.0  ;;  %v1295_v36 = vsub.f32 %v1175_v44, %v1259_v29  ;;  %v1296_v38 = vsub.f32 %v1951_v59, %v1259_v29  ;;  %v1261_v41 = vsel %vm1214_vm10, %v1954_v34, -inf  ;;  %v1185_v17 = vpop.f32.mrb[11].mxu1 }
 0x2b9   : > { %v1364_v13 = vadd.f32 %v1363_v35, %v1362_v49  ;;  %v1260_v42 = vsel %vm1214_vm10, %v1185_v17, -inf }
 0x2ba   : > { %v1319_v56 = vmul.f32 1.442695, %v1295_v36  ;;  %v1321_v45 = vmul.f32 1.442695, %v1296_v38  ;;  %v1262_v32 = vmax.f32 %v1260_v42, %v1261_v41 }
 0x2bb   : > { %v1365_v48 = vrot.slane %v1364_v13, 4 }
 0x2bc   : > { %2068 = vpow2.f32 %v1319_v56  ;;  %v1263_v50 = vrot.slane %v1262_v32, 4 }
 0x2bd   : > { %v1366_v58 = vadd.f32 %v1365_v48, %v1364_v13  ;;  %2070 = vpow2.f32 %v1321_v45 }
 0x2be   : > { %v1264_v61 = vmax.f32 %v1262_v32, %v1263_v50 }
 0x2bf   : > { %v1367_v40 = vrot.slane %v1366_v58, 2 }
 0x2c0   : > { %v1265_v57 = vrot.slane %v1264_v61, 2 }
 0x2c1   : > { %v2067_v60 = vpop.eup %2066  ;;  %v1368_v62 = vadd.f32 %v1367_v40, %v1366_v58 }
 0x2c2   : > { %v1266_v59 = vmax.f32 %v1264_v61, %v1265_v57  ;;  %v1420_v3 = vmul.f32 %v2067_v60, %v2059_v1  ;;  %v1419_v11 = vmul.f32 %v2067_v60, %v2057_v52 }
 0x2c3   : > { %v1369_v44 = vrot.slane %v1368_v62, 1 }
 0x2c4   : > { %v1267_v51 = vrot.slane %v1266_v59, 1  ;;  %1458 = vperm.xlu0 %2044, %v1420_v3   ;;  %1453 = vperm.xlu1 %2045, %v1419_v11  }
 0x2c5   : > { %v1370_v4 = vadd.f32 %v1369_v44, %v1368_v62 }
 0x2c6   : > { %v2796_v5 = vpop.eup %2068  ;;  %v1268_v7 = vmax.f32 %v1266_v59, %v1267_v51 }
 0x2c7   : > { %v2071_v8 = vpop.eup %2070  ;;  %v1371_v10 = vsel %vm1214_vm10, %v2796_v5, 0.0  ;;  %v1957_v12 = vpop.f32.mrb[12].mxu1  ;;  %2072 = vrcp.f32 %v1370_v4 }
 0x2c8   : > { %v1372_v16 = vsel %vm1214_vm10, %v2071_v8, 0.0  ;;  %v1297_v19 = vsub.f32 %v1185_v17, %v1268_v7  ;;  %v1298_v6 = vsub.f32 %v1954_v34, %v1268_v7  ;;  %v1270_v52 = vsel %vm1214_vm10, %v1957_v12, -inf  ;;  %v1195_v1 = vpop.f32.mrb[13].mxu1 }
 0x2c9   : > { %v1373_v18 = vadd.f32 %v1372_v16, %v1371_v10  ;;  %v1269_v47 = vsel %vm1214_vm10, %v1195_v1, -inf }
 0x2ca   : > { %v1323_v22 = vmul.f32 1.442695, %v1297_v19  ;;  %v1325_v20 = vmul.f32 1.442695, %v1298_v6  ;;  %v1271_v23 = vmax.f32 %v1269_v47, %v1270_v52 }
 0x2cb   : > { %v1374_v33 = vrot.slane %v1373_v18, 4 }
 0x2cc   : > { %2074 = vpow2.f32 %v1323_v22  ;;  %v1272_v26 = vrot.slane %v1271_v23, 4 }
 0x2cd   : > { %v1375_v37 = vadd.f32 %v1374_v33, %v1373_v18  ;;  %2076 = vpow2.f32 %v1325_v20 }
 0x2ce   : > { %v1273_v27 = vmax.f32 %v1271_v23, %v1272_v26 }
 0x2cf   : > { %v1376_v29 = vrot.slane %v1375_v37, 2 }
 0x2d0   : > { %v1274_v49 = vrot.slane %v1273_v27, 2 }
 0x2d1   : > { %v2073_v35 = vpop.eup %2072  ;;  %v1377_v36 = vadd.f32 %v1376_v29, %v1375_v37 }
 0x2d2   : > { %v1275_v34 = vmax.f32 %v1273_v27, %v1274_v49  ;;  %v1422_v38 = vmul.f32 %v2073_v35, %v2065_v21  ;;  %v1421_v41 = vmul.f32 %v2073_v35, %v2063_v28 }
 0x2d3   : > { %v1378_v17 = vrot.slane %v1377_v36, 1 }
 0x2d4   : > { %v1276_v13 = vrot.slane %v1275_v34, 1  ;;  %1468 = vperm.xlu0 %2044, %v1422_v38   ;;  %1463 = vperm.xlu1 %2045, %v1421_v41   ;;  %v1960_v42 = vpop.f32.mrb[14].mxu1 }
 0x2d5   : > { %v1279_v56 = vsel %vm1214_vm10, %v1960_v42, -inf  ;;  %v1205_v45 = vpop.f32.mrb[15].mxu1  ;;  %v1379_v32 = vadd.f32 %v1378_v17, %v1377_v36 }
 0x2d6   : > { %v2075_v48 = vpop.eup %2074  ;;  %v1277_v50 = vmax.f32 %v1275_v34, %v1276_v13  ;;  %v1278_v58 = vsel %vm1214_vm10, %v1205_v45, -inf }
 0x2d7   : > { %v2077_v61 = vpop.eup %2076  ;;  %v1380_v40 = vsel %vm1214_vm10, %v2075_v48, 0.0  ;;  %v1280_v57 = vmax.f32 %v1278_v58, %v1279_v56  ;;  %2078 = vrcp.f32 %v1379_v32 }
 0x2d8   : > { %v1381_v28 = vsel %vm1214_vm10, %v2077_v61, 0.0  ;;  %v1299_v21 = vsub.f32 %v1195_v1, %v1277_v50  ;;  %v1300_v60 = vsub.f32 %v1957_v12, %v1277_v50 }
 0x2d9   : > { %v1382_v62 = vadd.f32 %v1381_v28, %v1380_v40  ;;  %v1281_v59 = vrot.slane %v1280_v57, 4 }
 0x2da   : > { %v1327_v3 = vmul.f32 1.442695, %v1299_v21  ;;  %v1329_v11 = vmul.f32 1.442695, %v1300_v60 }
 0x2db   : > { %v1383_v44 = vrot.slane %v1382_v62, 4  ;;  %v1282_v51 = vmax.f32 %v1280_v57, %v1281_v59 }
 0x2dc   : > { %2080 = vpow2.f32 %v1327_v3 }
 0x2dd   : > { %v1384_v4 = vadd.f32 %v1383_v44, %v1382_v62  ;;  %2082 = vpow2.f32 %v1329_v11  ;;  %v1283_v7 = vrot.slane %v1282_v51, 2 }
 0x2df   : > { %v1385_v10 = vrot.slane %v1384_v4, 2  ;;  %v1284_v16 = vmax.f32 %v1282_v51, %v1283_v7  ;;  %v1623_v51 = vld [vmem:[%s2878_s4] sm:$0xff]  ;;  %v2168_v7 = vmov 0.0|0.0  }
 0x2e0   : > { %1992 = vmatprep.subr.bf16.mxu1 %v2168_v7 }
 0x2e1   : > { %v2079_v19 = vpop.eup %2078  ;;  %v1285_v6 = vrot.slane %v1284_v16, 1  ;;  %v1386_v52 = vadd.f32 %v1385_v10, %v1384_v4  ;;  %v1624_v4 = vld [vmem:[%s2878_s4 + $0x8] sm:$0xff] }
 0x2e2   : > { %v1424_v18 = vmul.f32 %v2079_v19, %v2071_v8  ;;  %v1423_v47 = vmul.f32 %v2079_v19, %v2796_v5  ;;  %v1993_v10 = vpack.c.bf16 %v1624_v4, %v1623_v51 }
 0x2e3   : > { %v1286_v1 = vmax.f32 %v1284_v16, %v1285_v6  ;;  %v1387_v12 = vrot.slane %v1386_v52, 1  ;;  %v2170_v16 = vmov 0.0  }
 0x2e4   : > { %1478 = vperm.xlu0 %2044, %v1424_v18   ;;  %1473 = vperm.xlu1 %2045, %v1423_v47  }
 0x2e5   : > { %v1301_v22 = vsub.f32 %v1205_v45, %v1286_v1  ;;  %v1302_v20 = vsub.f32 %v1960_v42, %v1286_v1  ;;  %v1388_v23 = vadd.f32 %v1387_v12, %v1386_v52  ;;  %1994 = vmatpush3.bf16.msra.mxu1 %v1993_v10  ;;  %1965 = vmatprep.mubr.msk.f32.mxu1 %vm2169_vm11, %v2170_v16  ;;  %vm1652_vm11 = vcmask 1047559  }
 0x2e6   : > { %v2081_v33 = vpop.eup %2080 }
 0x2e7   : > { %v2083_v26 = vpop.eup %2082  ;;  %v1389_v37 = vsel %vm1214_vm10, %v2081_v33, 0.0  ;;  %v1331_v27 = vmul.f32 1.442695, %v1301_v22  ;;  %v1333_v29 = vmul.f32 1.442695, %v1302_v20  ;;  %2084 = vrcp.f32 %v1388_v23 }
 0x2e8   : > { %v1390_v49 = vsel %vm1214_vm10, %v2083_v26, 0.0 }
 0x2e9   : > { %v1391_v35 = vadd.f32 %v1390_v49, %v1389_v37  ;;  %2086 = vpow2.f32 %v1331_v27 }
 0x2ea   : > { %2088 = vpow2.f32 %v1333_v29 }
 0x2eb   : > { %v1392_v5 = vrot.slane %v1391_v35, 4 }
 0x2ed   : > { %v1393_v8 = vadd.f32 %v1392_v5, %v1391_v35 }
 0x2ef   : > { %v1394_v36 = vrot.slane %v1393_v8, 2 }
 0x2f1   : > { %v2085_v34 = vpop.eup %2084  ;;  %v1395_v38 = vadd.f32 %v1394_v36, %v1393_v8 }
 0x2f2   : > { %v1426_v41 = vmul.f32 %v2085_v34, %v2077_v61  ;;  %v1425_v17 = vmul.f32 %v2085_v34, %v2075_v48 }
 0x2f3   : > { %v2087_v13 = vpop.eup %2086  ;;  %v1396_v42 = vrot.slane %v1395_v38, 1 }
 0x2f4   : > { %v2089_v56 = vpop.eup %2088  ;;  %v1398_v45 = vsel %vm1214_vm10, %v2087_v13, 0.0  ;;  %1488 = vperm.xlu0 %2044, %v1426_v41   ;;  %1483 = vperm.xlu1 %2045, %v1425_v17  }
 0x2f5   : > { %v1399_v32 = vsel %vm1214_vm10, %v2089_v56, 0.0  ;;  %v1397_v50 = vadd.f32 %v1396_v42, %v1395_v38 }
 0x2f6   : > { %v1400_v58 = vadd.f32 %v1399_v32, %v1398_v45 }
 0x2f7   : > { %2090 = vrcp.f32 %v1397_v50 }
 0x2f8   : > { %v1401_v40 = vrot.slane %v1400_v58, 4 }
 0x2fa   : > { %v1402_v57 = vadd.f32 %v1401_v40, %v1400_v58 }
 0x2fc   : > { %v1403_v28 = vrot.slane %v1402_v57, 2 }
 0x2fe   : > { %v1404_v21 = vadd.f32 %v1403_v28, %v1402_v57 }
 0x300   : > { %v1405_v60 = vrot.slane %v1404_v21, 1 }
 0x301   : > { %v2091_v62 = vpop.eup %2090 }
 0x302   : > { %v1428_v61 = vmul.f32 %v2091_v62, %v2083_v26  ;;  %v1427_v48 = vmul.f32 %v2091_v62, %v2081_v33  ;;  %v1406_v59 = vadd.f32 %v1405_v60, %v1404_v21 }
 0x304   : > { %1498 = vperm.xlu0 %2044, %v1428_v61   ;;  %1493 = vperm.xlu1 %2045, %v1427_v48   ;;  %2092 = vrcp.f32 %v1406_v59 }
 0x30e   : > { %v2093_v3 = vpop.eup %2092 }
 0x30f   : > { %v1430_v11 = vmul.f32 %v2093_v3, %v2089_v56  ;;  %v1429_v44 = vmul.f32 %v2093_v3, %v2087_v13 }
 0x311   : > { %1508 = vperm.xlu0 %2044, %v1430_v11   ;;  %1503 = vperm.xlu1 %2045, %v1429_v44  }
 0x323   : > { %v1439_v19 = vpop.permute.xlu1 %1438  ;;  %v1434_v6 = vpop.permute.xlu0 %1433 }
 0x324   : > { %v1512_v35 = vmul.f32 %v1439_v19, %v2702_v15  ;;  %v1511_v5 = vmul.f32 %v1434_v6, %v2698_v43 }
 0x333   : > { %v1449_v52 = vpop.permute.xlu0 %1448  ;;  %v1444_v18 = vpop.permute.xlu1 %1443 }
 0x334   : > { %v1514_v33 = vmul.f32 %v1449_v52, %v2712_v25  ;;  %v1513_v26 = vmul.f32 %v1444_v18, %v2708_v24 }
 0x336   : > { %v1537_v24 = vsel %vm692_vm4, %v1514_v33, 0.0 }
 0x343   : > { %v1459_v47 = vpop.permute.xlu0 %1458  ;;  %v1454_v1 = vpop.permute.xlu1 %1453 }
 0x344   : > { %v1516_v37 = vmul.f32 %v1459_v47, %v2722_v31  ;;  %v1515_v27 = vmul.f32 %v1454_v1, %v2718_v30  ;;  %v1536_v31 = vsel %vm692_vm4, %v1513_v26, 0.0 }
 0x345   : > { %v1538_v41 = vadd.f32 %v1537_v24, %v1536_v31 }
 0x346   : > { %v1546_v15 = vsel %vm692_vm4, %v1516_v37, 0.0  ;;  %v1545_v43 = vsel %vm692_vm4, %v1515_v27, 0.0 }
 0x347   : > { %v1539_v50 = vrot.slane %v1538_v41, 4 }
 0x349   : > { %v1540_v61 = vadd.f32 %v1539_v50, %v1538_v41 }
 0x34b   : > { %v1541_v19 = vrot.slane %v1540_v61, 2 }
 0x353   : > { %v1469_v12 = vpop.permute.xlu0 %1468  ;;  %v1464_v22 = vpop.permute.xlu1 %1463 }
 0x354   : > { %v1518_v8 = vmul.f32 %v1469_v12, %v2732_v39  ;;  %v1517_v36 = vmul.f32 %v1464_v22, %v2728_v55  ;;  %v1528_v39 = vsel %vm692_vm4, %v1512_v35, 0.0  ;;  %v1527_v55 = vsel %vm692_vm4, %v1511_v5, 0.0 }
 0x355   : > { %v1529_v56 = vadd.f32 %v1528_v39, %v1527_v55 }
 0x357   : > { %v1530_v57 = vrot.slane %v1529_v56, 4 }
 0x359   : > { %v1531_v44 = vadd.f32 %v1530_v57, %v1529_v56 }
 0x35b   : > { %v1532_v47 = vrot.slane %v1531_v44, 2 }
 0x35d   : > { %v1533_v33 = vadd.f32 %v1532_v47, %v1531_v44 }
 0x363   : > { %v1479_v20 = vpop.permute.xlu0 %1478  ;;  %v1474_v23 = vpop.permute.xlu1 %1473 }
 0x364   : > { %v1520_v34 = vmul.f32 %v1479_v20, %v2742_v0  ;;  %v1519_v25 = vmul.f32 %v1474_v23, %v2738_v46  ;;  %v1555_v0 = vsel %vm692_vm4, %v1518_v8, 0.0  ;;  %v1554_v46 = vsel %vm692_vm4, %v1517_v36, 0.0 }
 0x365   : > { %v1556_v45 = vadd.f32 %v1555_v0, %v1554_v46 }
 0x366   : > { %v1564_v17 = vsel %vm692_vm4, %v1520_v34, 0.0  ;;  %v1563_v13 = vsel %vm692_vm4, %v1519_v25, 0.0  ;;  %v1534_v25 = vrot.slane %v1533_v33, 1 }
 0x367   : > { %v1565_v32 = vadd.f32 %v1564_v17, %v1563_v13  ;;  %v1557_v28 = vrot.slane %v1556_v45, 4 }
 0x368   : > { %v1535_v46 = vadd.f32 %v1534_v25, %v1533_v33 }
 0x369   : > { %v1566_v21 = vrot.slane %v1565_v32, 4  ;;  %v1558_v51 = vadd.f32 %v1557_v28, %v1556_v45 }
 0x36a   : > { %v1607_v56 = vmul.f32 0.01, %v1535_v46  ;;  %vm1599_vm15 = vcmp.ge.f32.partialorder %v1535_v46, 0.0 }
 0x36b   : > { %v1567_v10 = vadd.f32 %v1566_v21, %v1565_v32  ;;  %v1559_v1 = vrot.slane %v1558_v51, 2 }
 0x36d   : > { %v1568_v12 = vrot.slane %v1567_v10, 2  ;;  %v1560_v26 = vadd.f32 %v1559_v1, %v1558_v51 }
 0x36f   : > { %v1569_v37 = vadd.f32 %v1568_v12, %v1567_v10  ;;  %v1561_v24 = vrot.slane %v1560_v26, 1 }
 0x371   : > { %v1570_v31 = vrot.slane %v1569_v37, 1  ;;  %v1562_v41 = vadd.f32 %v1561_v24, %v1560_v26 }
 0x373   : > { %v1489_v29 = vpop.permute.xlu0 %1488  ;;  %v1484_v49 = vpop.permute.xlu1 %1483  ;;  %v1571_v13 = vadd.f32 %v1570_v31, %v1569_v37  ;;  %v1610_v45 = vmul.f32 0.01, %v1562_v41  ;;  %vm1602_vm1 = vcmp.ge.f32.partialorder %v1562_v41, 0.0 }
 0x374   : > { %v1522_v30 = vmul.f32 %v1489_v29, %v2752_v54  ;;  %v1521_v38 = vmul.f32 %v1484_v49, %v2748_v53  ;;  %v1547_v54 = vadd.f32 %v1546_v15, %v1545_v43 }
 0x375   : > { %v1611_v50 = vmul.f32 0.01, %v1571_v13  ;;  %vm1603_vm2 = vcmp.ge.f32.partialorder %v1571_v13, 0.0 }
 0x376   : > { %v1573_v53 = vsel %vm692_vm4, %v1522_v30, 0.0  ;;  %v1572_v42 = vsel %vm692_vm4, %v1521_v38, 0.0  ;;  %v1548_v40 = vrot.slane %v1547_v54, 4 }
 0x377   : > { %v1574_v58 = vadd.f32 %v1573_v53, %v1572_v42 }
 0x378   : > { %v1549_v11 = vadd.f32 %v1548_v40, %v1547_v54 }
 0x379   : > { %v1575_v48 = vrot.slane %v1574_v58, 4 }
 0x37a   : > { %v1550_v52 = vrot.slane %v1549_v11, 2 }
 0x37b   : > { %v1576_v6 = vadd.f32 %v1575_v48, %v1574_v58 }
 0x37d   : > { %v1577_v20 = vrot.slane %v1576_v6, 2 }
 0x37f   : > { %v1578_v29 = vadd.f32 %v1577_v20, %v1576_v6 }
 0x381   : > { %v1579_v43 = vrot.slane %v1578_v29, 1 }
 0x383   : > { %v1499_v60 = vpop.permute.xlu0 %1498  ;;  %v1494_v62 = vpop.permute.xlu1 %1493 }
 0x384   : > { %v1524_v59 = vmul.f32 %v1499_v60, %v2762_v2  ;;  %v1523_v3 = vmul.f32 %v1494_v62, %v2758_v63  ;;  %v1542_v2 = vadd.f32 %v1541_v19, %v1540_v61  ;;  %v1551_v63 = vadd.f32 %v1550_v52, %v1549_v11 }
 0x385   : > { %v1615_v60 = vsel %vm1599_vm15, %v1535_v46, %v1607_v56  ;;  %v1618_v62 = vsel %vm1602_vm1, %v1562_v41, %v1610_v45 }
 0x386   : > { %v1582_v4 = vsel %vm692_vm4, %v1524_v59, 0.0  ;;  %v1581_v7 = vsel %vm692_vm4, %v1523_v3, 0.0  ;;  %v1543_v27 = vrot.slane %v1542_v2, 1  ;;  %v1552_v5 = vrot.slane %v1551_v63, 1 }
 0x387   : > { %v1583_v16 = vadd.f32 %v1582_v4, %v1581_v7  ;;  %v1619_v59 = vsel %vm1603_vm2, %v1571_v13, %v1611_v50 }
 0x388   : > { %v1544_v15 = vadd.f32 %v1543_v27, %v1542_v2  ;;  %v1553_v55 = vadd.f32 %v1552_v5, %v1551_v63 }
 0x389   : > { %v1584_v18 = vrot.slane %v1583_v16, 4 }
 0x38a   : > { %v1608_v54 = vmul.f32 0.01, %v1544_v15  ;;  %vm1600_vm13 = vcmp.ge.f32.partialorder %v1544_v15, 0.0  ;;  %vm1601_vm14 = vcmp.ge.f32.partialorder %v1553_v55, 0.0 }
 0x38b   : > { %v1585_v22 = vadd.f32 %v1584_v18, %v1583_v16  ;;  %v1836_v18 = vld [vmem:[%s2879_s5] ss:$0 sm:$0xff] }
 0x38c   : > { %v1616_v58 = vsel %vm1600_vm13, %v1544_v15, %v1608_v54 }
 0x38d   : > { %v1586_v23 = vrot.slane %v1585_v22, 2  ;;  %v1641_v48 = vsel %vm1640_vm12, %v1616_v58, %v1615_v60  ;;  %vm1726_vm12 = vcmask 15360  }
 0x38f   : > { %v1587_v8 = vadd.f32 %v1586_v23, %v1585_v22 }
 0x390   : > { %v1509_v49 = vpop.permute.xlu0 %1508  ;;  %v1504_v35 = vpop.permute.xlu1 %1503 }
 0x391   : > { %v1526_v36 = vmul.f32 %v1509_v49, %v2772_v9  ;;  %v1525_v34 = vmul.f32 %v1504_v35, %v2768_v14  ;;  %v1588_v0 = vrot.slane %v1587_v8, 1  ;;  %v1580_v9 = vadd.f32 %v1579_v43, %v1578_v29 }
 0x392   : > { %v1609_v14 = vmul.f32 0.01, %v1553_v55 }
 0x393   : > { %v1591_v30 = vsel %vm692_vm4, %v1526_v36, 0.0  ;;  %v1590_v38 = vsel %vm692_vm4, %v1525_v34, 0.0  ;;  %v1589_v42 = vadd.f32 %v1588_v0, %v1587_v8  ;;  %v1612_v40 = vmul.f32 0.01, %v1580_v9 }
 0x394   : > { %v1592_v39 = vadd.f32 %v1591_v30, %v1590_v38  ;;  %v1617_v28 = vsel %vm1601_vm14, %v1553_v55, %v1609_v14  ;;  %vm1604_vm5 = vcmp.ge.f32.partialorder %v1580_v9, 0.0 }
 0x395   : > { %v1613_v21 = vmul.f32 0.01, %v1589_v42  ;;  %vm1605_vm6 = vcmp.ge.f32.partialorder %v1589_v42, 0.0  ;;  %v1643_v3 = vsel %vm1642_vm0, %v1617_v28, %v1641_v48  ;;  %v1620_v11 = vsel %vm1604_vm5, %v1580_v9, %v1612_v40 }
 0x396   : > { %v1593_v17 = vrot.slane %v1592_v39, 4  ;;  %v1645_v51 = vsel %vm1644_vm3, %v1618_v62, %v1643_v3 }
 0x397   : > { %v1621_v4 = vsel %vm1605_vm6, %v1589_v42, %v1613_v21  ;;  %v1647_v10 = vsel %vm1646_vm7, %v1619_v59, %v1645_v51 }
 0x398   : > { %v1594_v53 = vadd.f32 %v1593_v17, %v1592_v39  ;;  %v1649_v16 = vsel %vm1648_vm8, %v1620_v11, %v1647_v10 }
 0x399   : > { %v1651_v6 = vsel %vm1650_vm9, %v1621_v4, %v1649_v16 }
 0x39a   : > { %v1595_v32 = vrot.slane %v1594_v53, 2 }
 0x39c   : > { %v1596_v57 = vadd.f32 %v1595_v32, %v1594_v53 }
 0x39e   : > { %v1597_v61 = vrot.slane %v1596_v57, 1 }
 0x3a0   : > { %v1598_v44 = vadd.f32 %v1597_v61, %v1596_v57 }
 0x3a2   : > { %v1614_v7 = vmul.f32 0.01, %v1598_v44  ;;  %vm1606_vm10 = vcmp.ge.f32.partialorder %v1598_v44, 0.0 }
 0x3a4   : > { %v1622_v19 = vsel %vm1606_vm10, %v1598_v44, %v1614_v7 }
 0x3a5   : > { %v1653_v52 = vsel %vm1652_vm11, %v1622_v19, %v1651_v6 }
 0x3a6   : > { %1966 = vmatmul.mubr.msk.f32.vlgmr.msra.gmra.mrb[16].mxu1 %vm692_vm4, %v1653_v52 }
 0x479   : > { %v1722_v47 = vpop.f32.mrb[16].mxu1 }
 0x47a   : > { %v1723_v1 = vadd.f32 %v1836_v18, %v1722_v47  ;;  %v1967_v12 = vpop.f32.mrb[17].mxu1 }
 0x47c   : > { %1727 = vst.msk [vmem:[%s271_s20] sm:$0xff] %vm1726_vm12, %v1723_v1 }
 0x47d PF: > { %p16_p8 = scmp.ge.s32.totalorder %s2228_s26, 4   ;;  %s2884_s21 = smov %s2150_s22 }
 0x47e   : > { %s2885_s22 = smov %s2154_s23  ;;  %s2886_s23 = smov %s2238_s29 }
 0x47f   : > { %s2887_s24 = smov %s2228_s26  ;;  %18 = sbr.rel (!%p16_p8) target bundleno = 3 (0x3), region = 84 }
 0x486   :  { %1747 = vsyncpa [#allocation3], 1 }
 0x487   :  { %1749 = vsyncpa [#allocation3 + $0x1], 1 }

</bundles_post_ra>
